<compile_context>
chip_gen: v7x
topology: tpu7x:2x2x1
jax: 0.10.0
libtpu: 0.0.40
codegen_flags: <defaults>
</compile_context>

<pallas_src>
import jax
import jax.numpy as jnp
from jax import lax
from jax.experimental import pallas as pl
from jax.experimental.pallas import tpu as pltpu


def _round_up(n, m):
    return ((n + m - 1) // m) * m


def pack_att_rows(att):
    """(H, C) -> (H, H*C) block-row matrix: row h holds att[h] in cols h*C:(h+1)*C."""
    H, C = att.shape
    return (jnp.eye(H, dtype=att.dtype)[:, :, None] * att[:, None, :]).reshape(H, H * C)


def prepare_params(params):
    """Pack every weight into ONE lane-dense f32 slab (single pallas operand / DMA).

    Each block's rows are padded to a multiple of 8 so every in-kernel slice is a
    sublane-aligned static view.  Returns (slab, layout) with layout[name] =
    (row_offset, rows, cols)."""
    blocks = []
    for l, (w, att_src, att_dst) in enumerate(params["layers"]):
        blocks.append((f"w{l}", w))
        blocks.append((f"asrc{l}", pack_att_rows(att_src)))
        blocks.append((f"adst{l}", pack_att_rows(att_dst)))
    blocks += [("mlp_w1", params["w1"]), ("mlp_b1", params["b1"]),
               ("mlp_w2", params["w2"]), ("mlp_b2", params["b2"])]

    lane_w = max(int(a.shape[1]) for _, a in blocks)
    layout, rows, off = {}, [], 0
    for name, a in blocks:
        r, c = int(a.shape[0]), int(a.shape[1])
        rpad = _round_up(r, 8)
        blk = jnp.zeros((rpad, lane_w), jnp.float32).at[:r, :c].set(a.astype(jnp.float32))
        rows.append(blk)
        layout[name] = (off, r, c)
        off += rpad
    return jnp.concatenate(rows, axis=0), layout


# --------------------------------------------------------------------------------
# fused kernel: adjacency -> L x GATConv(+ReLU) -> mean pool -> MLP -> (log_)softmax
# --------------------------------------------------------------------------------
def _make_fused_kernel(num_layers, num_heads, per_head, num_graphs, num_nodes,
                       num_edges, layout, neg_slope=0.2):
    H, C, G, N, E = num_heads, per_head, num_graphs, num_nodes, num_edges
    f32 = jnp.float32

    def kernel(x_ref, ints_ref, prm_ref, out_ref):
        def P(name):                       # static, sublane-aligned slab view
            off, r, c = layout[name]
            return prm_ref[off:off + r, 0:c]

        # ---- additive attention mask from the edge list (dedup + self-loops), on MXU ----
        src_row = ints_ref[0:1, 0:E]                               # (1, E) int32
        dst_row = ints_ref[1:2, 0:E]
        bat_row = ints_ref[2:3, 0:N]                               # (1, N) int32
        node_iota = lax.broadcasted_iota(jnp.int32, (N, E), 0)
        src_oh = (node_iota == src_row).astype(f32)                # (N, E)
        dst_oh = (node_iota == dst_row).astype(f32)
        # adj_cnt[i, j] = #edges j -> i   (A @ B^T via dot_general, no transpose op)
        adj_cnt = lax.dot_general(dst_oh, src_oh, (((1,), (1,)), ((), ())),
                                  preferred_element_type=f32)      # (N, N)
        eye_b = (lax.broadcasted_iota(jnp.int32, (N, N), 0) ==
                 lax.broadcasted_iota(jnp.int32, (N, N), 1))
        mask_bias = jnp.where((adj_cnt > 0.0) | eye_b,
                              jnp.float32(0.0), jnp.float32(-1e30))  # computed ONCE

        # --------------------------------- GAT layers ---------------------------------
        h = x_ref[...]                                             # (N, Fin)
        for l in range(num_layers):                                # static unroll
            w = P(f"w{l}")                                         # (Fin_l, H*C)
            asrc_rows = P(f"asrc{l}")                              # (H, H*C) block rows
            adst_rows = P(f"adst{l}")                              # (H, H*C) block rows

            xp = jnp.dot(h, w, preferred_element_type=f32)         # (N, H*C)
            # batched per-head attention projections on the MXU (no per-head reductions)
            a_dst_t = lax.dot_general(adst_rows, xp, (((1,), (1,)), ((), ())),
                                      preferred_element_type=f32)  # (H, N)
            a_src_t = lax.dot_general(asrc_rows, xp, (((1,), (1,)), ((), ())),
                                      preferred_element_type=f32)  # (H, N)

            # all heads stacked: LeakyReLU / mask / max / exp / sum / div issued once
            e = a_dst_t[:, :, None] + a_src_t[:, None, :]          # (H, N, N)
            e = jnp.maximum(e, neg_slope * e)                      # LeakyReLU(0.2)
            e = e + mask_bias[None, :, :]                          # additive mask
            e = e - jnp.max(e, axis=-1, keepdims=True)
            p = jnp.exp(e)                                         # masked -> exactly 0
            attn = p / jnp.sum(p, axis=-1, keepdims=True)          # exact normalization

            # per-head value matmuls: pure MXU pushes (same count as a batched dot),
            # then one lane concat + fused ReLU.
            heads = [jnp.dot(attn[hh], xp[:, hh * C:(hh + 1) * C],
                             preferred_element_type=f32) for hh in range(H)]
            h = jnp.maximum(jnp.concatenate(heads, axis=-1), 0.0)  # (N, H*C)

        # ------------------------------ global_mean_pool ------------------------------
        graph_iota = lax.broadcasted_iota(jnp.int32, (G, N), 0)
        pool_oh = (graph_iota == bat_row).astype(f32)              # [g, i] = (batch[i]==g)
        counts = jnp.maximum(jnp.sum(pool_oh, axis=-1, keepdims=True), 1.0)
        pooled = jnp.dot(pool_oh, h, preferred_element_type=f32) / counts   # (G, hid)

        # ---------------------------------- MLP head ----------------------------------
        h1 = jnp.maximum(jnp.dot(pooled, P("mlp_w1"),
                                 preferred_element_type=f32) + P("mlp_b1"), 0.0)
        last = jnp.dot(h1, P("mlp_w2"), preferred_element_type=f32) + P("mlp_b2")

        z = last - jnp.max(last, axis=-1, keepdims=True)
        logp = z - jnp.log(jnp.sum(jnp.exp(z), axis=-1, keepdims=True))      # log_softmax
        soft = jnp.exp(logp)                     # softmax(log_softmax(x)) == exp(logp)

        # one lane-packed store: [logp | soft | last]
        out_ref[...] = jnp.concatenate([logp, soft, last], axis=-1)

    return kernel


# --------------------------------------------------------------------------------
# wrapper: one gridless pallas_call for the whole forward
# --------------------------------------------------------------------------------
def gat_forward(x, edge_index, batch, param_slab, layout, *, num_heads, per_head,
                num_layers, out_channels, num_graphs):
    N = x.shape[0]
    E = edge_index.shape[1]
    W = max(E, N)

    # pack edge_index + batch into one int32 slab, padded with -1 (never matches iota)
    src = jnp.pad(edge_index[0:1].astype(jnp.int32), ((0, 0), (0, W - E)), constant_values=-1)
    dst = jnp.pad(edge_index[1:2].astype(jnp.int32), ((0, 0), (0, W - E)), constant_values=-1)
    bat = jnp.pad(batch.reshape(1, N).astype(jnp.int32), ((0, 0), (0, W - N)), constant_values=-1)
    ints = jnp.concatenate([src, dst, bat], axis=0)                # (3, W)

    kernel = _make_fused_kernel(num_layers, num_heads, per_head, num_graphs, N, E, layout)
    vmem = pl.BlockSpec(memory_space=pltpu.MemorySpace.VMEM)
    out = pl.pallas_call(
        kernel,
        out_shape=jax.ShapeDtypeStruct((num_graphs, 3 * out_channels), jnp.float32),
        in_specs=[vmem, vmem, vmem],
        out_specs=vmem,
    )(x.astype(jnp.float32), ints, param_slab)

    oc = out_channels
    return out[:, :oc], out[:, oc:2 * oc], out[:, 2 * oc:]


# --------------------------------------------------------------------------------
# pure-JAX reference (same semantics) for a numerical sanity check
# --------------------------------------------------------------------------------
def _reference_forward(x, edge_index, batch, params, num_graphs, neg_slope=0.2):
    N = x.shape[0]
    src, dst = edge_index[0], edge_index[1]
    adj = jnp.zeros((N, N), jnp.float32).at[dst, src].set(1.0)     # adj[i, j]: edge j->i
    adj = jnp.maximum(adj, jnp.eye(N, dtype=jnp.float32))          # self-loops
    mask = adj > 0
    h = x
    for (w, a_s, a_d) in params["layers"]:
        H, C = a_s.shape
        xp = h @ w
        xph = xp.reshape(N, H, C)
        dst_s = jnp.einsum('nhc,hc->nh', xph, a_d)
        src_s = jnp.einsum('nhc,hc->nh', xph, a_s)
        e = dst_s[:, None, :] + src_s[None, :, :]                  # (i, j, h)
        e = jnp.where(e > 0, e, neg_slope * e)
        e = jnp.where(mask[:, :, None], e, -jnp.inf)
        attn = jax.nn.softmax(e, axis=1)
        h = jax.nn.relu(jnp.einsum('ijh,jhc->ihc', attn, xph).reshape(N, H * C))
    oh = jax.nn.one_hot(batch, num_graphs, dtype=jnp.float32)      # (N, G)
    pooled = (oh.T @ h) / jnp.maximum(oh.sum(0)[:, None], 1.0)
    h1 = jax.nn.relu(pooled @ params["w1"] + params["b1"])
    last = h1 @ params["w2"] + params["b2"]
    logp = jax.nn.log_softmax(last, -1)
    return logp, jnp.exp(logp), last


if __name__ == "__main__":
    jax.config.update("jax_default_matmul_precision", "highest")

    # sizes implied by the module: GATConv(in, hidden//4, heads=4, bias=False) per layer
    in_channels, hidden, out_channels, num_layers = 8, 32, 4, 2
    heads, per_head = 4, hidden // 4
    N, G = 16, 2

    key = jax.random.PRNGKey(0)
    ks = jax.random.split(key, 3 * num_layers + 5)

    layers = []
    f_in = in_channels
    for l in range(num_layers):
        w = 0.1 * jax.random.normal(ks[3 * l + 0], (f_in, heads * per_head), jnp.float32)
        a_s = 0.1 * jax.random.normal(ks[3 * l + 1], (heads, per_head), jnp.float32)
        a_d = 0.1 * jax.random.normal(ks[3 * l + 2], (heads, per_head), jnp.float32)
        layers.append((w, a_s, a_d))
        f_in = heads * per_head

    params = {
        "layers": layers,
        "w1": 0.1 * jax.random.normal(ks[-5], (hidden, hidden), jnp.float32),
        "b1": 0.1 * jax.random.normal(ks[-4], (1, hidden), jnp.float32),
        "w2": 0.1 * jax.random.normal(ks[-3], (hidden, out_channels), jnp.float32),
        "b2": 0.1 * jax.random.normal(ks[-2], (1, out_channels), jnp.float32),
    }
    param_slab, layout = prepare_params(params)     # ONE lane-dense weight slab

    # input graph: two 8-node ring graphs (directed edges both ways), no duplicates
    x = jax.random.normal(ks[-1], (N, in_channels), jnp.float32)
    srcs, dsts = [], []
    for g in range(G):
        base = g * 8
        for i in range(8):
            a, b = base + i, base + (i + 1) % 8
            srcs += [a, b]
            dsts += [b, a]
    edge_index = jnp.array([srcs, dsts], dtype=jnp.int32)          # (2, 32)
    batch = jnp.array([0] * 8 + [1] * 8, dtype=jnp.int32)
    # NOTE: edge_weight is unused by the reference forward (GATConv called with
    # edge_index only), so it is not an input to the kernel.

    logp, soft, last = gat_forward(x, edge_index, batch, param_slab, layout,
                                   num_heads=heads, per_head=per_head,
                                   num_layers=num_layers, out_channels=out_channels,
                                   num_graphs=G)
    jax.block_until_ready((logp, soft, last))

    assert logp.shape == (G, out_channels)
    assert soft.shape == (G, out_channels)
    assert last.shape == (G, out_channels)
    assert bool(jnp.all(jnp.isfinite(logp))) and bool(jnp.all(jnp.isfinite(soft)))

    r_logp, r_soft, r_last = _reference_forward(x, edge_index, batch, params, G)
    assert bool(jnp.allclose(logp, r_logp, rtol=1e-3, atol=1e-3))
    assert bool(jnp.allclose(soft, r_soft, rtol=1e-3, atol=1e-3))
    assert bool(jnp.allclose(last, r_last, rtol=1e-3, atol=1e-3))
    print("KERNEL_OK")
</pallas_src>

<mosaic_0001>
module attributes {stable_mosaic.version = 11 : i64} {
  func.func @kernel(%arg0: memref<16x8xf32, #tpu.memory_space<vmem>>, %arg1: memref<3x32xi32, #tpu.memory_space<vmem>>, %arg2: memref<152x32xf32, #tpu.memory_space<vmem>>, %arg3: memref<2x12xf32, #tpu.memory_space<vmem>>) attributes {dimension_semantics = [], scalar_prefetch = 0 : i64, scratch_operands = 0 : i64, tpu.core_type = #tpu.core_type<tc>} {
    %c0 = arith.constant 0 : index
    %c0_0 = arith.constant 0 : index
    %0 = vector.load %arg1[%c0, %c0_0] : memref<3x32xi32, #tpu.memory_space<vmem>>, vector<1x32xi32>
    %c1 = arith.constant 1 : index
    %c0_1 = arith.constant 0 : index
    %1 = vector.load %arg1[%c1, %c0_1] : memref<3x32xi32, #tpu.memory_space<vmem>>, vector<1x32xi32>
    %c2 = arith.constant 2 : index
    %c0_2 = arith.constant 0 : index
    %2 = vector.load %arg1[%c2, %c0_2] : memref<3x32xi32, #tpu.memory_space<vmem>>, vector<1x16xi32>
    %3 = tpu.iota {dimensions = array<i32: 0>} : vector<16x32xi32>
    %4 = vector.broadcast %0 : vector<1x32xi32> to vector<16x32xi32>
    %5 = arith.cmpi eq, %3, %4 : vector<16x32xi32>
    %6 = arith.extui %5 : vector<16x32xi1> to vector<16x32xi32>
    %7 = arith.sitofp %6 : vector<16x32xi32> to vector<16x32xf32>
    %8 = vector.broadcast %1 : vector<1x32xi32> to vector<16x32xi32>
    %9 = arith.cmpi eq, %3, %8 : vector<16x32xi32>
    %10 = arith.extui %9 : vector<16x32xi1> to vector<16x32xi32>
    %11 = arith.sitofp %10 : vector<16x32xi32> to vector<16x32xf32>
    %cst = arith.constant dense<0.000000e+00> : vector<16x16xf32>
    %12 = tpu.matmul %11, %7, %cst {dimension_numbers = #tpu.dot_dimension_numbers<[1], [1], [0], [0], [0, 0, 1, 0], [], []>, precision = #tpu.contract_precision<fp32>} : vector<16x32xf32>, vector<16x32xf32>, vector<16x16xf32> -> vector<16x16xf32>
    %13 = tpu.iota {dimensions = array<i32: 0>} : vector<16x16xi32>
    %14 = tpu.iota {dimensions = array<i32: 1>} : vector<16x16xi32>
    %15 = arith.cmpi eq, %13, %14 : vector<16x16xi32>
    %cst_3 = arith.constant 0.000000e+00 : f32
    %16 = vector.broadcast %cst_3 : f32 to vector<16x16xf32>
    %17 = arith.cmpf ogt, %12, %16 : vector<16x16xf32>
    %18 = arith.ori %17, %15 : vector<16x16xi1>
    %cst_4 = arith.constant 0.000000e+00 : f32
    %cst_5 = arith.constant -1.000000e+30 : f32
    %19 = vector.broadcast %cst_4 : f32 to vector<16x16xf32>
    %20 = vector.broadcast %cst_5 : f32 to vector<16x16xf32>
    %21 = arith.select %18, %19, %20 : vector<16x16xi1>, vector<16x16xf32>
    %c0_6 = arith.constant 0 : index
    %c0_7 = arith.constant 0 : index
    %22 = vector.load %arg0[%c0_6, %c0_7] : memref<16x8xf32, #tpu.memory_space<vmem>>, vector<16x8xf32>
    %c0_8 = arith.constant 0 : index
    %c0_9 = arith.constant 0 : index
    %23 = vector.load %arg2[%c0_8, %c0_9] : memref<152x32xf32, #tpu.memory_space<vmem>>, vector<8x32xf32>
    %c8 = arith.constant 8 : index
    %c0_10 = arith.constant 0 : index
    %24 = vector.load %arg2[%c8, %c0_10] : memref<152x32xf32, #tpu.memory_space<vmem>>, vector<4x32xf32>
    %c16 = arith.constant 16 : index
    %c0_11 = arith.constant 0 : index
    %25 = vector.load %arg2[%c16, %c0_11] : memref<152x32xf32, #tpu.memory_space<vmem>>, vector<4x32xf32>
    %cst_12 = arith.constant dense<0.000000e+00> : vector<16x32xf32>
    %26 = tpu.matmul %22, %23, %cst_12 {dimension_numbers = #tpu.dot_dimension_numbers<[1], [0], [0], [1], [0, 0, 1, 1], [], []>, precision = #tpu.contract_precision<fp32>} : vector<16x8xf32>, vector<8x32xf32>, vector<16x32xf32> -> vector<16x32xf32>
    %cst_13 = arith.constant dense<0.000000e+00> : vector<4x16xf32>
    %27 = tpu.matmul %25, %26, %cst_13 {dimension_numbers = #tpu.dot_dimension_numbers<[1], [1], [0], [0], [0, 0, 1, 0], [], []>, precision = #tpu.contract_precision<fp32>} : vector<4x32xf32>, vector<16x32xf32>, vector<4x16xf32> -> vector<4x16xf32>
    %cst_14 = arith.constant dense<0.000000e+00> : vector<4x16xf32>
    %28 = tpu.matmul %24, %26, %cst_14 {dimension_numbers = #tpu.dot_dimension_numbers<[1], [1], [0], [0], [0, 0, 1, 0], [], []>, precision = #tpu.contract_precision<fp32>} : vector<4x32xf32>, vector<16x32xf32>, vector<4x16xf32> -> vector<4x16xf32>
    %29 = vector.shape_cast %27 : vector<4x16xf32> to vector<4x16x1xf32>
    %30 = vector.shape_cast %28 : vector<4x16xf32> to vector<4x1x16xf32>
    %31 = vector.broadcast %29 : vector<4x16x1xf32> to vector<4x16x16xf32>
    %32 = vector.broadcast %30 : vector<4x1x16xf32> to vector<4x16x16xf32>
    %33 = arith.addf %31, %32 : vector<4x16x16xf32>
    %cst_15 = arith.constant 2.000000e-01 : f32
    %34 = vector.broadcast %cst_15 : f32 to vector<4x16x16xf32>
    %35 = arith.mulf %34, %33 : vector<4x16x16xf32>
    %36 = arith.maximumf %33, %35 : vector<4x16x16xf32>
    %37 = vector.shape_cast %21 : vector<16x16xf32> to vector<1x16x16xf32>
    %38 = vector.broadcast %37 : vector<1x16x16xf32> to vector<4x16x16xf32>
    %39 = arith.addf %36, %38 : vector<4x16x16xf32>
    %cst_16 = arith.constant dense<0xFF800000> : vector<4x16xf32>
    %40 = vector.multi_reduction <maximumf>, %39, %cst_16 [2] : vector<4x16x16xf32> to vector<4x16xf32>
    %41 = vector.shape_cast %40 : vector<4x16xf32> to vector<4x16x1xf32>
    %42 = vector.broadcast %41 : vector<4x16x1xf32> to vector<4x16x16xf32>
    %43 = arith.subf %39, %42 : vector<4x16x16xf32>
    %44 = math.exp %43 : vector<4x16x16xf32>
    %cst_17 = arith.constant dense<0.000000e+00> : vector<4x16xf32>
    %45 = vector.multi_reduction <add>, %44, %cst_17 [2] : vector<4x16x16xf32> to vector<4x16xf32>
    %46 = vector.shape_cast %45 : vector<4x16xf32> to vector<4x16x1xf32>
    %47 = vector.broadcast %46 : vector<4x16x1xf32> to vector<4x16x16xf32>
    %48 = arith.divf %44, %47 : vector<4x16x16xf32>
    %49 = vector.extract_strided_slice %48 {offsets = [0, 0, 0], sizes = [1, 16, 16], strides = [1, 1, 1]} : vector<4x16x16xf32> to vector<1x16x16xf32>
    %50 = vector.shape_cast %49 : vector<1x16x16xf32> to vector<16x16xf32>
    %51 = vector.extract_strided_slice %26 {offsets = [0, 0], sizes = [16, 8], strides = [1, 1]} : vector<16x32xf32> to vector<16x8xf32>
    %cst_18 = arith.constant dense<0.000000e+00> : vector<16x8xf32>
    %52 = tpu.matmul %50, %51, %cst_18 {dimension_numbers = #tpu.dot_dimension_numbers<[1], [0], [0], [1], [0, 0, 1, 1], [], []>, precision = #tpu.contract_precision<fp32>} : vector<16x16xf32>, vector<16x8xf32>, vector<16x8xf32> -> vector<16x8xf32>
    %53 = vector.extract_strided_slice %48 {offsets = [1, 0, 0], sizes = [1, 16, 16], strides = [1, 1, 1]} : vector<4x16x16xf32> to vector<1x16x16xf32>
    %54 = vector.shape_cast %53 : vector<1x16x16xf32> to vector<16x16xf32>
    %55 = vector.extract_strided_slice %26 {offsets = [0, 8], sizes = [16, 8], strides = [1, 1]} : vector<16x32xf32> to vector<16x8xf32>
    %cst_19 = arith.constant dense<0.000000e+00> : vector<16x8xf32>
    %56 = tpu.matmul %54, %55, %cst_19 {dimension_numbers = #tpu.dot_dimension_numbers<[1], [0], [0], [1], [0, 0, 1, 1], [], []>, precision = #tpu.contract_precision<fp32>} : vector<16x16xf32>, vector<16x8xf32>, vector<16x8xf32> -> vector<16x8xf32>
    %57 = vector.extract_strided_slice %48 {offsets = [2, 0, 0], sizes = [1, 16, 16], strides = [1, 1, 1]} : vector<4x16x16xf32> to vector<1x16x16xf32>
    %58 = vector.shape_cast %57 : vector<1x16x16xf32> to vector<16x16xf32>
    %59 = vector.extract_strided_slice %26 {offsets = [0, 16], sizes = [16, 8], strides = [1, 1]} : vector<16x32xf32> to vector<16x8xf32>
    %cst_20 = arith.constant dense<0.000000e+00> : vector<16x8xf32>
    %60 = tpu.matmul %58, %59, %cst_20 {dimension_numbers = #tpu.dot_dimension_numbers<[1], [0], [0], [1], [0, 0, 1, 1], [], []>, precision = #tpu.contract_precision<fp32>} : vector<16x16xf32>, vector<16x8xf32>, vector<16x8xf32> -> vector<16x8xf32>
    %61 = vector.extract_strided_slice %48 {offsets = [3, 0, 0], sizes = [1, 16, 16], strides = [1, 1, 1]} : vector<4x16x16xf32> to vector<1x16x16xf32>
    %62 = vector.shape_cast %61 : vector<1x16x16xf32> to vector<16x16xf32>
    %63 = vector.extract_strided_slice %26 {offsets = [0, 24], sizes = [16, 8], strides = [1, 1]} : vector<16x32xf32> to vector<16x8xf32>
    %cst_21 = arith.constant dense<0.000000e+00> : vector<16x8xf32>
    %64 = tpu.matmul %62, %63, %cst_21 {dimension_numbers = #tpu.dot_dimension_numbers<[1], [0], [0], [1], [0, 0, 1, 1], [], []>, precision = #tpu.contract_precision<fp32>} : vector<16x16xf32>, vector<16x8xf32>, vector<16x8xf32> -> vector<16x8xf32>
    %65 = tpu.concatenate %52, %56, %60, %64 in 1 : vector<16x8xf32>, vector<16x8xf32>, vector<16x8xf32>, vector<16x8xf32> -> vector<16x32xf32>
    %cst_22 = arith.constant 0.000000e+00 : f32
    %66 = vector.broadcast %cst_22 : f32 to vector<16x32xf32>
    %67 = arith.maximumf %65, %66 : vector<16x32xf32>
    %c24 = arith.constant 24 : index
    %c0_23 = arith.constant 0 : index
    %68 = vector.load %arg2[%c24, %c0_23] : memref<152x32xf32, #tpu.memory_space<vmem>>, vector<32x32xf32>
    %c56 = arith.constant 56 : index
    %c0_24 = arith.constant 0 : index
    %69 = vector.load %arg2[%c56, %c0_24] : memref<152x32xf32, #tpu.memory_space<vmem>>, vector<4x32xf32>
    %c64 = arith.constant 64 : index
    %c0_25 = arith.constant 0 : index
    %70 = vector.load %arg2[%c64, %c0_25] : memref<152x32xf32, #tpu.memory_space<vmem>>, vector<4x32xf32>
    %cst_26 = arith.constant dense<0.000000e+00> : vector<16x32xf32>
    %71 = tpu.matmul %67, %68, %cst_26 {dimension_numbers = #tpu.dot_dimension_numbers<[1], [0], [0], [1], [0, 0, 1, 1], [], []>, precision = #tpu.contract_precision<fp32>} : vector<16x32xf32>, vector<32x32xf32>, vector<16x32xf32> -> vector<16x32xf32>
    %cst_27 = arith.constant dense<0.000000e+00> : vector<4x16xf32>
    %72 = tpu.matmul %70, %71, %cst_27 {dimension_numbers = #tpu.dot_dimension_numbers<[1], [1], [0], [0], [0, 0, 1, 0], [], []>, precision = #tpu.contract_precision<fp32>} : vector<4x32xf32>, vector<16x32xf32>, vector<4x16xf32> -> vector<4x16xf32>
    %cst_28 = arith.constant dense<0.000000e+00> : vector<4x16xf32>
    %73 = tpu.matmul %69, %71, %cst_28 {dimension_numbers = #tpu.dot_dimension_numbers<[1], [1], [0], [0], [0, 0, 1, 0], [], []>, precision = #tpu.contract_precision<fp32>} : vector<4x32xf32>, vector<16x32xf32>, vector<4x16xf32> -> vector<4x16xf32>
    %74 = vector.shape_cast %72 : vector<4x16xf32> to vector<4x16x1xf32>
    %75 = vector.shape_cast %73 : vector<4x16xf32> to vector<4x1x16xf32>
    %76 = vector.broadcast %74 : vector<4x16x1xf32> to vector<4x16x16xf32>
    %77 = vector.broadcast %75 : vector<4x1x16xf32> to vector<4x16x16xf32>
    %78 = arith.addf %76, %77 : vector<4x16x16xf32>
    %cst_29 = arith.constant 2.000000e-01 : f32
    %79 = vector.broadcast %cst_29 : f32 to vector<4x16x16xf32>
    %80 = arith.mulf %79, %78 : vector<4x16x16xf32>
    %81 = arith.maximumf %78, %80 : vector<4x16x16xf32>
    %82 = vector.shape_cast %21 : vector<16x16xf32> to vector<1x16x16xf32>
    %83 = vector.broadcast %82 : vector<1x16x16xf32> to vector<4x16x16xf32>
    %84 = arith.addf %81, %83 : vector<4x16x16xf32>
    %cst_30 = arith.constant dense<0xFF800000> : vector<4x16xf32>
    %85 = vector.multi_reduction <maximumf>, %84, %cst_30 [2] : vector<4x16x16xf32> to vector<4x16xf32>
    %86 = vector.shape_cast %85 : vector<4x16xf32> to vector<4x16x1xf32>
    %87 = vector.broadcast %86 : vector<4x16x1xf32> to vector<4x16x16xf32>
    %88 = arith.subf %84, %87 : vector<4x16x16xf32>
    %89 = math.exp %88 : vector<4x16x16xf32>
    %cst_31 = arith.constant dense<0.000000e+00> : vector<4x16xf32>
    %90 = vector.multi_reduction <add>, %89, %cst_31 [2] : vector<4x16x16xf32> to vector<4x16xf32>
    %91 = vector.shape_cast %90 : vector<4x16xf32> to vector<4x16x1xf32>
    %92 = vector.broadcast %91 : vector<4x16x1xf32> to vector<4x16x16xf32>
    %93 = arith.divf %89, %92 : vector<4x16x16xf32>
    %94 = vector.extract_strided_slice %93 {offsets = [0, 0, 0], sizes = [1, 16, 16], strides = [1, 1, 1]} : vector<4x16x16xf32> to vector<1x16x16xf32>
    %95 = vector.shape_cast %94 : vector<1x16x16xf32> to vector<16x16xf32>
    %96 = vector.extract_strided_slice %71 {offsets = [0, 0], sizes = [16, 8], strides = [1, 1]} : vector<16x32xf32> to vector<16x8xf32>
    %cst_32 = arith.constant dense<0.000000e+00> : vector<16x8xf32>
    %97 = tpu.matmul %95, %96, %cst_32 {dimension_numbers = #tpu.dot_dimension_numbers<[1], [0], [0], [1], [0, 0, 1, 1], [], []>, precision = #tpu.contract_precision<fp32>} : vector<16x16xf32>, vector<16x8xf32>, vector<16x8xf32> -> vector<16x8xf32>
    %98 = vector.extract_strided_slice %93 {offsets = [1, 0, 0], sizes = [1, 16, 16], strides = [1, 1, 1]} : vector<4x16x16xf32> to vector<1x16x16xf32>
    %99 = vector.shape_cast %98 : vector<1x16x16xf32> to vector<16x16xf32>
    %100 = vector.extract_strided_slice %71 {offsets = [0, 8], sizes = [16, 8], strides = [1, 1]} : vector<16x32xf32> to vector<16x8xf32>
    %cst_33 = arith.constant dense<0.000000e+00> : vector<16x8xf32>
    %101 = tpu.matmul %99, %100, %cst_33 {dimension_numbers = #tpu.dot_dimension_numbers<[1], [0], [0], [1], [0, 0, 1, 1], [], []>, precision = #tpu.contract_precision<fp32>} : vector<16x16xf32>, vector<16x8xf32>, vector<16x8xf32> -> vector<16x8xf32>
    %102 = vector.extract_strided_slice %93 {offsets = [2, 0, 0], sizes = [1, 16, 16], strides = [1, 1, 1]} : vector<4x16x16xf32> to vector<1x16x16xf32>
    %103 = vector.shape_cast %102 : vector<1x16x16xf32> to vector<16x16xf32>
    %104 = vector.extract_strided_slice %71 {offsets = [0, 16], sizes = [16, 8], strides = [1, 1]} : vector<16x32xf32> to vector<16x8xf32>
    %cst_34 = arith.constant dense<0.000000e+00> : vector<16x8xf32>
    %105 = tpu.matmul %103, %104, %cst_34 {dimension_numbers = #tpu.dot_dimension_numbers<[1], [0], [0], [1], [0, 0, 1, 1], [], []>, precision = #tpu.contract_precision<fp32>} : vector<16x16xf32>, vector<16x8xf32>, vector<16x8xf32> -> vector<16x8xf32>
    %106 = vector.extract_strided_slice %93 {offsets = [3, 0, 0], sizes = [1, 16, 16], strides = [1, 1, 1]} : vector<4x16x16xf32> to vector<1x16x16xf32>
    %107 = vector.shape_cast %106 : vector<1x16x16xf32> to vector<16x16xf32>
    %108 = vector.extract_strided_slice %71 {offsets = [0, 24], sizes = [16, 8], strides = [1, 1]} : vector<16x32xf32> to vector<16x8xf32>
    %cst_35 = arith.constant dense<0.000000e+00> : vector<16x8xf32>
    %109 = tpu.matmul %107, %108, %cst_35 {dimension_numbers = #tpu.dot_dimension_numbers<[1], [0], [0], [1], [0, 0, 1, 1], [], []>, precision = #tpu.contract_precision<fp32>} : vector<16x16xf32>, vector<16x8xf32>, vector<16x8xf32> -> vector<16x8xf32>
    %110 = tpu.concatenate %97, %101, %105, %109 in 1 : vector<16x8xf32>, vector<16x8xf32>, vector<16x8xf32>, vector<16x8xf32> -> vector<16x32xf32>
    %cst_36 = arith.constant 0.000000e+00 : f32
    %111 = vector.broadcast %cst_36 : f32 to vector<16x32xf32>
    %112 = arith.maximumf %110, %111 : vector<16x32xf32>
    %113 = tpu.iota {dimensions = array<i32: 0>} : vector<2x16xi32>
    %114 = vector.broadcast %2 : vector<1x16xi32> to vector<2x16xi32>
    %115 = arith.cmpi eq, %113, %114 : vector<2x16xi32>
    %116 = arith.extui %115 : vector<2x16xi1> to vector<2x16xi32>
    %117 = arith.sitofp %116 : vector<2x16xi32> to vector<2x16xf32>
    %cst_37 = arith.constant dense<0.000000e+00> : vector<2xf32>
    %118 = vector.multi_reduction <add>, %117, %cst_37 [1] : vector<2x16xf32> to vector<2xf32>
    %119 = vector.shape_cast %118 : vector<2xf32> to vector<2x1xf32>
    %cst_38 = arith.constant 1.000000e+00 : f32
    %120 = vector.broadcast %cst_38 : f32 to vector<2x1xf32>
    %121 = arith.maximumf %119, %120 : vector<2x1xf32>
    %cst_39 = arith.constant dense<0.000000e+00> : vector<2x32xf32>
    %122 = tpu.matmul %117, %112, %cst_39 {dimension_numbers = #tpu.dot_dimension_numbers<[1], [0], [0], [1], [0, 0, 1, 1], [], []>, precision = #tpu.contract_precision<fp32>} : vector<2x16xf32>, vector<16x32xf32>, vector<2x32xf32> -> vector<2x32xf32>
    %123 = vector.broadcast %121 : vector<2x1xf32> to vector<2x32xf32>
    %124 = arith.divf %122, %123 : vector<2x32xf32>
    %c72 = arith.constant 72 : index
    %c0_40 = arith.constant 0 : index
    %125 = vector.load %arg2[%c72, %c0_40] : memref<152x32xf32, #tpu.memory_space<vmem>>, vector<32x32xf32>
    %cst_41 = arith.constant dense<0.000000e+00> : vector<2x32xf32>
    %126 = tpu.matmul %124, %125, %cst_41 {dimension_numbers = #tpu.dot_dimension_numbers<[1], [0], [0], [1], [0, 0, 1, 1], [], []>, precision = #tpu.contract_precision<fp32>} : vector<2x32xf32>, vector<32x32xf32>, vector<2x32xf32> -> vector<2x32xf32>
    %c104 = arith.constant 104 : index
    %c0_42 = arith.constant 0 : index
    %127 = vector.load %arg2[%c104, %c0_42] : memref<152x32xf32, #tpu.memory_space<vmem>>, vector<1x32xf32>
    %128 = vector.broadcast %127 : vector<1x32xf32> to vector<2x32xf32>
    %129 = arith.addf %126, %128 : vector<2x32xf32>
    %cst_43 = arith.constant 0.000000e+00 : f32
    %130 = vector.broadcast %cst_43 : f32 to vector<2x32xf32>
    %131 = arith.maximumf %129, %130 : vector<2x32xf32>
    %c112 = arith.constant 112 : index
    %c0_44 = arith.constant 0 : index
    %132 = vector.load %arg2[%c112, %c0_44] : memref<152x32xf32, #tpu.memory_space<vmem>>, vector<32x4xf32>
    %cst_45 = arith.constant dense<0.000000e+00> : vector<2x4xf32>
    %133 = tpu.matmul %131, %132, %cst_45 {dimension_numbers = #tpu.dot_dimension_numbers<[1], [0], [0], [1], [0, 0, 1, 1], [], []>, precision = #tpu.contract_precision<fp32>} : vector<2x32xf32>, vector<32x4xf32>, vector<2x4xf32> -> vector<2x4xf32>
    %c144 = arith.constant 144 : index
    %c0_46 = arith.constant 0 : index
    %134 = vector.load %arg2[%c144, %c0_46] : memref<152x32xf32, #tpu.memory_space<vmem>>, vector<1x4xf32>
    %135 = vector.broadcast %134 : vector<1x4xf32> to vector<2x4xf32>
    %136 = arith.addf %133, %135 : vector<2x4xf32>
    %cst_47 = arith.constant dense<0xFF800000> : vector<2xf32>
    %137 = vector.multi_reduction <maximumf>, %136, %cst_47 [1] : vector<2x4xf32> to vector<2xf32>
    %138 = vector.shape_cast %137 : vector<2xf32> to vector<2x1xf32>
    %139 = vector.broadcast %138 : vector<2x1xf32> to vector<2x4xf32>
    %140 = arith.subf %136, %139 : vector<2x4xf32>
    %141 = math.exp %140 : vector<2x4xf32>
    %cst_48 = arith.constant dense<0.000000e+00> : vector<2xf32>
    %142 = vector.multi_reduction <add>, %141, %cst_48 [1] : vector<2x4xf32> to vector<2xf32>
    %143 = vector.shape_cast %142 : vector<2xf32> to vector<2x1xf32>
    %144 = math.log %143 : vector<2x1xf32>
    %145 = vector.broadcast %144 : vector<2x1xf32> to vector<2x4xf32>
    %146 = arith.subf %140, %145 : vector<2x4xf32>
    %147 = math.exp %146 : vector<2x4xf32>
    %148 = tpu.concatenate %146, %147, %136 in 1 : vector<2x4xf32>, vector<2x4xf32>, vector<2x4xf32> -> vector<2x12xf32>
    %c0_49 = arith.constant 0 : index
    %c0_50 = arith.constant 0 : index
    %149 = vector.load %arg3[%c0_49, %c0_50] : memref<2x12xf32, #tpu.memory_space<vmem>>, vector<2x12xf32>
    tpu.vector_store %arg3[%c0_49, %c0_50], %148 {strides = array<i32>} : memref<2x12xf32, #tpu.memory_space<vmem>>, vector<2x12xf32>,
    return
  }
}

</mosaic_0001>

<bundles_post_ra>
// kernel: tpu_custom_call.1
= control target key start
LH: loop header
LB: loop body
LE: loop exit
PB: predicated region body
PF: predicated region fallthrough
CT: control target
= control target key end

     0   :  { %vm571_vm0 = vcmask 64512   ;;  %v18_v3 = vlaneseq  ;;  %vm41_vm1 = vcmask 261120   ;;  %s12399_s0 = inlined_call_operand.vmem [shape: f32[16,8], index: 0, kind: input, shape index: {}]   ;;  %s12400_s1 = inlined_call_operand.vmem [shape: s32[3,32], index: 1, kind: input, shape index: {}]   ;;  %s12401_s2 = inlined_call_operand.vmem [shape: f32[152,32], index: 2, kind: input, shape index: {}]   ;;  %s12402_s3 = inlined_call_operand.hbm [shape: f32[2,12], index: 3, kind: output, shape index: {}]  }
   0x1   :  { %v568_v0 = vld [vmem:[%s12401_s2] sm:$0xff]  ;;  %v567_v2 = vld [vmem:[%s12399_s0 + $0x8] sm:$0xff] }
   0x2   :  { %v566_v1 = vld [vmem:[%s12399_s0] sm:$0xff]  ;;  %v11590_v4 = vand.u32 4294901760, %v568_v0  ;;  %v576_v6 = vsel %vm571_vm0, %v567_v2, 0  ;;  %v11602_v10 = vshrl.u32 %v18_v3, 7 }
   0x3   :  { %v573_v5 = vsel %vm571_vm0, %v566_v1, 0  ;;  %v9564_v7 = vld [vmem:[%s12400_s1] ss:$0 sm:$0xff]  ;;  %v11599_v9 = vand.u32 4294901760, %v576_v6  ;;  %v9567_v11 = vld [vmem:[%s12400_s1 + $0x1] ss:$0 sm:$0xff] }
   0x4   :  { %v11597_v8 = vand.u32 4294901760, %v573_v5  ;;  %10051 = vmatprep.subr.mxu1 %v11590_v4  ;;  %v666_v12 = vsub.f32 %v568_v0, %v11590_v4 }
   0x5   :  { %8 = vsyncpa [#allocation3], 0  ;;  %10052 = vmatpush3.msra.mxu1 %v11590_v4  ;;  %v11614_v14 = vsub.f32 %v576_v6, %v11599_v9  ;;  %v11617_v15 = vadd.s32 8, %v11602_v10  ;;  %vm25_vm2 = vcmp.eq.s32.totalorder %v11602_v10, %v9564_v7  ;;  %v11548_v17 = vmov 0.0   ;;  %v570_v56 = vld [vmem:[%s12401_s2 + $0x10] sm:$0xf] }
   0x6   :  { %v11611_v13 = vsub.f32 %v573_v5, %v11597_v8  ;;  %v11620_v16 = vand.u32 4294901760, %v666_v12  ;;  %v9565_v18 = vsel %vm25_vm2, 1.0, %v11548_v17  ;;  %vm35_vm3 = vcmp.eq.s32.totalorder %v11602_v10, %v9567_v11  ;;  %vm11632_vm6 = vmpackc.low %vm41_vm1, %vm41_vm1  ;;  %v569_v57 = vld [vmem:[%s12401_s2 + $0x8] sm:$0xf]  ;;  %s11553_s25 = smov 120   ;;  %s11554_s26 = smov 112  }
   0x7   :  { %v656_v20 = vand.u32 4294901760, %v11614_v14  ;;  %vm26_vm4 = vcmp.eq.s32.totalorder %v11617_v15, %v9564_v7  ;;  %vm36_vm5 = vcmp.eq.s32.totalorder %v11617_v15, %v9567_v11  ;;  %v11637_v24 = vsel %vm35_vm3, 1.0, %v11548_v17  ;;  %s11555_s27 = smov 104   ;;  %s11556_s28 = smov 16  }
   0x8   :  { %v646_v19 = vand.u32 4294901760, %v11611_v13  ;;  %v668_v21 = vsub.f32 %v666_v12, %v11620_v16  ;;  %v9566_v22 = vsel %vm26_vm4, 1.0, %v11548_v17  ;;  %v49_v25 = vsel %vm41_vm1, %v9565_v18, 0  ;;  %s11557_s6 = smov 8   ;;  %s11558_s11 = smov 24  }
   0x9   :  { %v657_v27 = vsub.f32 %v11614_v14, %v656_v20  ;;  %v11644_v28 = vpack.c.bf16 %v9566_v22, %v9565_v18  ;;  %v43_v29 = vsel %vm41_vm1, %v11637_v24, 0  ;;  %v52_v32 = vsel %vm41_vm1, %v9566_v22, 0  ;;  %s11560_s10 = smov [#allocation2]  }
   0xa   :  { %v647_v26 = vsub.f32 %v11611_v13, %v646_v19  ;;  %v669_v30 = vand.u32 4294901760, %v668_v21  ;;  %v122_v31 = vsub.f32 %v43_v29, %v43_v29  ;;  %v143_v33 = vsub.f32 %v49_v25, %v49_v25 }
   0xb   :  { %v658_v35 = vand.u32 4294901760, %v657_v27  ;;  %10827 = vmatprep.subr.msk.bf16.mxu0 %vm11632_vm6, %v11644_v28  ;;  %v150_v36 = vsub.f32 %v52_v32, %v52_v32  ;;  %v9569_v37 = vsel %vm36_vm5, 1.0, %v11548_v17  ;;  %v11549_v55 = vmov 0.0|0.0  }
   0xc   :  { %v648_v34 = vand.u32 4294901760, %v647_v26  ;;  %10056 = vmatprep.subr.mxu1 %v669_v30  ;;  %10830 = vmatpush3.bf16.xpose.msk.msra.mxu0 %vm11632_vm6, %v11644_v28  ;;  %v123_v38 = vand.u32 4294901760, %v122_v31  ;;  %v144_v39 = vand.u32 4294901760, %v143_v33  ;;  %v46_v40 = vsel %vm41_vm1, %v9569_v37, 0 }
   0xd   :  { %v151_v41 = vand.u32 4294901760, %v150_v36  ;;  %v132_v42 = vsub.f32 %v46_v40, %v46_v40  ;;  %v10835_v53 = vpack.c.bf16 %v150_v36, %v143_v33  ;;  %vm11550_vm7 = vmmov 0  }
   0xe   :  { %10053 = vmatprep.mubr.f32.mxu1 %v648_v34  ;;  %v124_v43 = vsub.f32 %v122_v31, %v123_v38  ;;  %v145_v44 = vsub.f32 %v143_v33, %v144_v39  ;;  %v1068_v58 = vsel %vm41_vm1, %v570_v56, 0  ;;  %v1536_v59 = vsel %vm41_vm1, %v569_v57, 0 }
   0xf   :  { %10054 = vmatmul.mubr.f32.vlgmr.msra.gmra.mrb[0].mxu1 %v658_v35  ;;  %v152_v45 = vsub.f32 %v150_v36, %v151_v41  ;;  %v133_v46 = vand.u32 4294901760, %v132_v42  ;;  %v10845_v54 = vpack.c.bf16 %v151_v41, %v144_v39  ;;  %v11710_v60 = vand.u32 4294901760, %v1068_v58 }
  0x10   :  { %10057 = vmatpush3.msra.mxu1 %v669_v30  ;;  %10058 = vmatprep.mubr.f32.mxu1 %v11597_v8  ;;  %v125_v47 = vand.u32 4294901760, %v124_v43  ;;  %v146_v48 = vand.u32 4294901760, %v145_v44  ;;  %v11712_v61 = vand.u32 4294901760, %v1536_v59  ;;  %v2010_v44 = vsub.s32 1, %v11602_v10 }
  0x11   :  { %10061 = vmatprep.subr.mxu1 %v666_v12  ;;  %v153_v49 = vand.u32 4294901760, %v152_v45  ;;  %v134_v50 = vsub.f32 %v132_v42, %v133_v46  ;;  %v11715_v62 = vsub.f32 %v1068_v58, %v11710_v60  ;;  %v11787_v45 = vsub.s32 0, %v11602_v10 }
  0x12   :  { %10013 = vmatprep.mubr.f32.mxu0 %v125_v47  ;;  %v11718_v63 = vsub.f32 %v1536_v59, %v11712_v61  ;;  %vm2118_vm14 = vcmask 130048   ;;  %vm4285_vm15 = vcmask 195584   ;;  %vm8058_vm3 = vcmask 123904  }
  0x13   :  { %v10831_v51 = vpack.c.bf16 %v153_v49, %v146_v48  ;;  %v135_v52 = vand.u32 4294901760, %v134_v50  ;;  %v1145_v5 = vand.u32 4294901760, %v11715_v62  ;;  %vm9545_vm4 = vcmask 31744  }
  0x14   :  { %vm9548_vm5 = vcmask 91136  }
  0x15   :  { %10832 = vmatprep.subr.bf16.mxu0 %v10831_v51  ;;  %10014 = vmatmul.mubr.f32.vlgmr.msra.gmra.mrb[0].mxu0 %v135_v52  ;;  %v2021_v52 = vsub.s32 2, %v11602_v10 }
  0x16   :  { %10834 = vmatpush3.bf16.xpose.msra.mxu0 %v10831_v51  ;;  %10020 = vmatprep.mubr.msk.f32.mxu0 %vm41_vm1, %v11637_v24 }
  0x17   :  { %10059 = vmatmul.mubr.f32.vlgmr.msra.gmra.mrb[0].mxu1 %v11599_v9  ;;  %10836 = vmatprep.subr.bf16.mxu0 %v10835_v53 }
  0x18   :  { %10062 = vmatpush3.msra.mxu1 %v666_v12  ;;  %10063 = vmatprep.mubr.f32.mxu1 %v11611_v13 }
  0x19   :  { %10066 = vmatprep.subr.mxu1 %v11590_v4 }
  0x1d   :  { %10021 = vmatmul.mubr.msk.f32.vlgmr.msra.gmra.mrb[0].mxu0 %vm41_vm1, %v9569_v37 }
  0x1e   :  { %10838 = vmatpush3.bf16.xpose.msra.mxu0 %v10835_v53  ;;  %10027 = vmatprep.mubr.f32.mxu0 %v122_v31 }
  0x1f   :  { %10064 = vmatmul.mubr.f32.vlgmr.msra.gmra.mrb[0].mxu1 %v11614_v14  ;;  %10841 = vmatprep.subr.msk.bf16.mxu0 %vm11632_vm6, %v11644_v28 }
  0x20   :  { %10067 = vmatpush3.msra.mxu1 %v11590_v4  ;;  %10068 = vmatprep.mubr.f32.mxu1 %v646_v19 }
  0x21   :  { %10071 = vmatprep.subr.mxu1 %v11620_v16 }
  0x25   :  { %10028 = vmatmul.mubr.f32.vlgmr.msra.gmra.mrb[0].mxu0 %v132_v42 }
  0x26   :  { %10844 = vmatpush3.bf16.xpose.msk.msra.mxu0 %vm11632_vm6, %v11644_v28  ;;  %10034 = vmatprep.mubr.f32.mxu0 %v123_v38 }
  0x27   :  { %10069 = vmatmul.mubr.f32.vlgmr.msra.gmra.mrb[0].mxu1 %v656_v20  ;;  %10846 = vmatprep.subr.bf16.mxu0 %v10845_v54  ;;  %v1146_v20 = vsub.f32 %v11715_v62, %v1145_v5 }
  0x28   :  { %10072 = vmatpush3.msra.mxu1 %v11620_v16  ;;  %10073 = vmatprep.mubr.f32.mxu1 %v11597_v8 }
  0x29   :  { %10076 = vmatprep.subr.mxu1 %v11590_v4  ;;  %v1147_v35 = vand.u32 4294901760, %v1146_v20 }
  0x2d   :  { %10035 = vmatmul.mubr.f32.vlgmr.msra.gmra.mrb[0].mxu0 %v133_v46 }
  0x2e   :  { %10848 = vmatpush3.bf16.xpose.msra.mxu0 %v10845_v54  ;;  %10041 = vmatprep.mubr.msk.f32.mxu0 %vm41_vm1, %v11637_v24  ;;  %v11551_v54 = vmov 1966171168  }
  0x2f   :  { %10074 = vmatmul.mubr.f32.vlgmr.msra.gmra.mrb[0].mxu1 %v11599_v9  ;;  %10851 = vmatprep.subr.msk.bf16.mxu0 %vm11632_vm6, %v11644_v28  ;;  %v2043_v56 = vunpack.c.l.s4 %v11551_v54 }
  0x30   :  { %10077 = vmatpush3.msra.mxu1 %v11590_v4  ;;  %10078 = vmatprep.mubr.f32.mxu1 %v11597_v8 }
  0x31   :  { %10855 = vmatprep.subr.bf16.mxu1 %v11549_v55  ;;  %v2044_v57 = vunpack.c.0.s8 %v2043_v56 }
  0x33   :  { %v11796_v58 = vsub.s32 %v2044_v57, %v11602_v10 }
  0x35   :  { %10042 = vmatmul.mubr.msk.f32.vlgmr.msra.gmra.mrb[0].mxu0 %vm41_vm1, %v9569_v37 }
  0x36   :  { %10854 = vmatpush3.bf16.xpose.msk.msra.mxu0 %vm11632_vm6, %v11644_v28  ;;  %10048 = vmatprep.mubr.msk.f32.mxu0 %vm41_vm1, %v11637_v24 }
  0x37   :  { %10079 = vmatmul.mubr.f32.vlgmr.msra.gmra.mrb[0].mxu1 %v11599_v9  ;;  %10873 = vmatprep.subr.bf16.mxu0 %v11549_v55  ;;  %v1607_v9 = vand.u32 4294901760, %v11718_v63 }
  0x38   :  { %10085 = vmatprep.mubr.msk.f32.mxu1 %vm11550_vm7, %v11548_v17 }
  0x39   :  { %v1608_v23 = vsub.f32 %v11718_v63, %v1607_v9 }
  0x3d   :  { %10049 = vmatmul.mubr.msk.f32.vlgmr.msra.gmra.mrb[0].mxu0 %vm41_vm1, %v9569_v37  ;;  %v1609_v37 = vand.u32 4294901760, %v1608_v23 }
  0x3e   :  { %10127 = vmatprep.mubr.msk.f32.mxu0 %vm11550_vm7, %v11548_v17 }
 0x10a   :  { %v11720_v0 = vpop.f32.mrb[0].mxu1 }
 0x10b   :  { %v1074_v1 = vsel %vm41_vm1, %v11720_v0, 0  ;;  %v2217_v2 = vand.u32 4294901760, %v11720_v0  ;;  %v11725_v4 = vpop.f32.mrb[1].mxu1 }
 0x10c   :  { %v1080_v6 = vand.u32 4294901760, %v1074_v1  ;;  %v1071_v7 = vsel %vm41_vm1, %v11725_v4, 0  ;;  %v2214_v8 = vand.u32 4294901760, %v11725_v4 }
 0x10d   :  { %v1077_v11 = vand.u32 4294901760, %v1071_v7  ;;  %v2309_v12 = vsub.f32 %v11720_v0, %v2217_v2 }
 0x10e   :  { %v1162_v13 = vsub.f32 %v1074_v1, %v1080_v6  ;;  %v11733_v14 = vpack.c.bf16 %v2217_v2, %v2214_v8  ;;  %v2302_v16 = vsub.f32 %v11725_v4, %v2214_v8  ;;  %v11552_v8 = vmov -1e+30  }
 0x10f   :  { %v10856_v18 = vpack.c.bf16 %v1080_v6, %v1077_v11  ;;  %v1155_v19 = vsub.f32 %v1071_v7, %v1077_v11  ;;  %v2310_v21 = vand.u32 4294901760, %v2309_v12 }
 0x110   :  { %v1163_v22 = vand.u32 4294901760, %v1162_v13  ;;  %v2303_v24 = vand.u32 4294901760, %v2302_v16  ;;  %v11738_v25 = vpack.c.bf16 %v2309_v12, %v2302_v16  ;;  %v10050_v42 = vpop.f32.mrb[0].mxu0 }
 0x111   :  { %10857 = vmatpush3.bf16.xpose.msra.mxu1 %v10856_v18  ;;  %10875 = vmatpush3.bf16.xpose.msra.mxu0 %v10856_v18  ;;  %v1156_v26 = vand.u32 4294901760, %v1155_v19  ;;  %v10862_v27 = vpack.c.bf16 %v1162_v13, %v1155_v19  ;;  %v2311_v28 = vsub.f32 %v2309_v12, %v2310_v21  ;;  %v546_v43 = vpop.f32.mrb[1].mxu0  ;;  %vm561_vm12 = vcmp.gt.f32.partialorder %v10050_v42, 0.0 }
 0x112   :  { %10858 = vmatprep.subr.bf16.mxu1 %v11549_v55  ;;  %10876 = vmatprep.subr.bf16.mxu0 %v11549_v55  ;;  %v1164_v29 = vsub.f32 %v1162_v13, %v1163_v22  ;;  %v2304_v30 = vsub.f32 %v2302_v16, %v2303_v24  ;;  %v11742_v31 = vpack.c.bf16 %v2310_v21, %v2303_v24  ;;  %vm560_vm9 = vcmp.gt.f32.partialorder %v546_v43, 0.0 }
 0x113   :  { %v1157_v32 = vsub.f32 %v1155_v19, %v1156_v26  ;;  %v10868_v33 = vpack.c.bf16 %v1163_v22, %v1156_v26  ;;  %v2312_v34 = vand.u32 4294901760, %v2311_v28  ;;  %v2032_v19 = vsub.s32 3, %v11602_v10 }
 0x114   :  { %v1165_v36 = vand.u32 4294901760, %v1164_v29  ;;  %v2305_v38 = vand.u32 4294901760, %v2304_v30 }
 0x115   :  { %v1158_v39 = vand.u32 4294901760, %v1157_v32 }
 0x116   :  { %v11744_v40 = vpack.c.bf16 %v2312_v34, %v2305_v38 }
 0x117   :  { %v10859_v41 = vpack.c.bf16 %v1165_v36, %v1158_v39 }
 0x118   :  { %10086 = vmatmul.mubr.f32.vlgmr.msra.gmra.mrb[2].mxu1 %v1147_v35  ;;  %10128 = vmatmul.mubr.f32.vlgmr.msra.gmra.mrb[2].mxu0 %v1609_v37 }
 0x119   :  { %10860 = vmatpush3.bf16.xpose.msra.mxu1 %v10859_v41  ;;  %10878 = vmatpush3.bf16.xpose.msra.mxu0 %v10859_v41 }
 0x11a   :  { %10092 = vmatprep.mubr.msk.f32.mxu1 %vm11550_vm7, %v11548_v17  ;;  %10861 = vmatprep.subr.bf16.mxu1 %v11549_v55 }
 0x11b   :  { %10134 = vmatprep.mubr.msk.f32.mxu0 %vm11550_vm7, %v11548_v17  ;;  %10879 = vmatprep.subr.bf16.mxu0 %v11549_v55 }
 0x120   :  { %10093 = vmatmul.mubr.f32.vlgmr.msra.gmra.mrb[2].mxu1 %v11710_v60  ;;  %10135 = vmatmul.mubr.f32.vlgmr.msra.gmra.mrb[2].mxu0 %v11712_v61 }
 0x121   :  { %10863 = vmatpush3.bf16.xpose.msra.mxu1 %v10862_v27  ;;  %10881 = vmatpush3.bf16.xpose.msra.mxu0 %v10862_v27 }
 0x122   :  { %10099 = vmatprep.mubr.msk.f32.mxu1 %vm11550_vm7, %v11548_v17  ;;  %10864 = vmatprep.subr.bf16.mxu1 %v11549_v55 }
 0x123   :  { %10141 = vmatprep.mubr.msk.f32.mxu0 %vm11550_vm7, %v11548_v17  ;;  %10882 = vmatprep.subr.bf16.mxu0 %v11549_v55 }
 0x128   :  { %10100 = vmatmul.mubr.f32.vlgmr.msra.gmra.mrb[2].mxu1 %v11715_v62  ;;  %10142 = vmatmul.mubr.f32.vlgmr.msra.gmra.mrb[2].mxu0 %v11718_v63 }
 0x129   :  { %10866 = vmatpush3.bf16.xpose.msra.mxu1 %v10856_v18  ;;  %10884 = vmatpush3.bf16.xpose.msra.mxu0 %v10856_v18 }
 0x12a   :  { %10106 = vmatprep.mubr.msk.f32.mxu1 %vm11550_vm7, %v11548_v17  ;;  %10867 = vmatprep.subr.bf16.mxu1 %v11549_v55 }
 0x12b   :  { %10148 = vmatprep.mubr.msk.f32.mxu0 %vm11550_vm7, %v11548_v17  ;;  %10885 = vmatprep.subr.bf16.mxu0 %v11549_v55 }
 0x130   :  { %10107 = vmatmul.mubr.f32.vlgmr.msra.gmra.mrb[2].mxu1 %v1145_v5  ;;  %10149 = vmatmul.mubr.f32.vlgmr.msra.gmra.mrb[2].mxu0 %v1607_v9 }
 0x131   :  { %10869 = vmatpush3.bf16.xpose.msra.mxu1 %v10868_v33  ;;  %10887 = vmatpush3.bf16.xpose.msra.mxu0 %v10868_v33 }
 0x132   :  { %10113 = vmatprep.mubr.msk.f32.mxu1 %vm11550_vm7, %v11548_v17  ;;  %10870 = vmatprep.subr.bf16.mxu1 %v11549_v55 }
 0x133   :  { %10155 = vmatprep.mubr.msk.f32.mxu0 %vm11550_vm7, %v11548_v17  ;;  %10888 = vmatprep.subr.bf16.mxu0 %v11549_v55 }
 0x138   :  { %10114 = vmatmul.mubr.f32.vlgmr.msra.gmra.mrb[2].mxu1 %v11710_v60  ;;  %10156 = vmatmul.mubr.f32.vlgmr.msra.gmra.mrb[2].mxu0 %v11712_v61 }
 0x139   :  { %10872 = vmatpush3.bf16.xpose.msra.mxu1 %v10856_v18  ;;  %10890 = vmatpush3.bf16.xpose.msra.mxu0 %v10856_v18 }
 0x13a   :  { %10892 = vmatprep.subr.bf16.mxu1 %v11733_v14  ;;  %10120 = vmatprep.mubr.msk.f32.mxu1 %vm11550_vm7, %v11548_v17 }
 0x13b   :  { %10162 = vmatprep.mubr.msk.f32.mxu0 %vm11550_vm7, %v11548_v17 }
 0x140   :  { %10121 = vmatmul.mubr.f32.vlgmr.msra.gmra.mrb[2].mxu1 %v11710_v60  ;;  %10163 = vmatmul.mubr.f32.vlgmr.msra.gmra.mrb[2].mxu0 %v11712_v61  ;;  %v557_v61 = vand.u32 127, %v18_v3 }
 0x141   :  { %10894 = vmatpush3.bf16.msra.mxu1 %v11733_v14 }
 0x142   :  { %10896 = vmatprep.subr.bf16.mxu1 %v11744_v40  ;;  %vm558_vm8 = vcmp.eq.s32.totalorder %v11602_v10, %v557_v61  ;;  %vm559_vm11 = vcmp.eq.s32.totalorder %v11617_v15, %v557_v61 }
 0x143   :  { %vm562_vm10 = vmor %vm560_vm9, %vm558_vm8 }
 0x144   :  { %v11804_v9 = vsel %vm562_vm10, 0.0, %v11552_v8  ;;  %vm563_vm13 = vmor %vm561_vm12, %vm559_vm11 }
 0x145   :  { %v11807_v13 = vsel %vm563_vm13, 0.0, %v11552_v8 }
 0x213   :  { %v1531_v46 = vpop.f32.mrb[2].mxu1  ;;  %v1993_v47 = vpop.f32.mrb[2].mxu0 }
 0x214   :  { %v10122_v48 = vpop.f32.mrb[3].mxu1  ;;  %v2011_v49 = vrot.slane %v1531_v46, %v2010_v44  ;;  %v2000_v50 = vrot.slane %v1531_v46, %v11787_v45  ;;  %v10164_v51 = vpop.f32.mrb[3].mxu0  ;;  %v2022_v53 = vrot.slane %v1531_v46, %v2021_v52  ;;  %v2048_v59 = vrot.slane %v1993_v47, %v11796_v58 }
 0x215   :  { %v2033_v20 = vrot.slane %v1531_v46, %v2032_v19 }
 0x216   :  { %2013 = vbcast.lane.b32.xlu1 %v2011_v49, 256  ;;  %2002 = vbcast.lane.b32.xlu0 %v2000_v50, 256  ;;  %v2056_v60 = vrot.slane %v2048_v59, %v11796_v58  ;;  %v2049_v21 = vcombine.high %v2048_v59, %v2048_v59 }
 0x218   :  { %v2069_v62 = vrot.slane %v2056_v60, %v11787_v45  ;;  %v2063_v23 = vrot.slane %v2049_v21, %v11796_v58  ;;  %v2064_v26 = vcombine.high %v2056_v60, %v2056_v60 }
 0x21a   :  { %2017 = vbcast.lane.b32.xlu1 %v2011_v49, 264  ;;  %2006 = vbcast.lane.b32.xlu0 %v2000_v50, 264  ;;  %v2073_v24 = vrot.slane %v2063_v23, %v11787_v45  ;;  %v2077_v30 = vrot.slane %v2064_v26, %v11787_v45  ;;  %v2065_v57 = vcombine.high %v2063_v23, %v2063_v23 }
 0x21e   :  { %2028 = vbcast.lane.b32.xlu1 %v2022_v53, 264  ;;  %2024 = vbcast.lane.b32.xlu0 %v2022_v53, 256 }
 0x288   :  { %v2003_v63 = vpop.permute.xlu0 %2002  ;;  %v2014_v22 = vpop.permute.xlu1 %2013 }
 0x289   :  { %v2086_v1 = vadd.f32 %v2069_v62, %v2003_v63  ;;  %v2088_v28 = vadd.f32 %v2073_v24, %v2014_v22  ;;  %v2081_v63 = vrot.slane %v2065_v57, %v11787_v45 }
 0x28b   :  { %v2094_v2 = vmul.f32 0.2, %v2086_v1  ;;  %v2096_v33 = vmul.f32 0.2, %v2088_v28 }
 0x28c   :  { %v2007_v5 = vpop.permute.xlu0 %2006  ;;  %v2018_v27 = vpop.permute.xlu1 %2017 }
 0x28d   :  { %v2102_v6 = vmax.f32 %v2086_v1, %v2094_v2  ;;  %v2087_v7 = vadd.f32 %v2069_v62, %v2007_v5  ;;  %v2089_v32 = vadd.f32 %v2073_v24, %v2018_v27  ;;  %v2104_v37 = vmax.f32 %v2088_v28, %v2096_v33 }
 0x28f   :  { %v2095_v3 = vmul.f32 0.2, %v2087_v7  ;;  %v2110_v11 = vadd.f32 %v2102_v6, %v11804_v9  ;;  %v2097_v36 = vmul.f32 0.2, %v2089_v32  ;;  %v2112_v46 = vadd.f32 %v2104_v37, %v11804_v9 }
 0x290   :  { %v2025_v29 = vpop.permute.xlu0 %2024  ;;  %v2029_v35 = vpop.permute.xlu1 %2028 }
 0x291   :  { %v2103_v12 = vmax.f32 %v2087_v7, %v2095_v3  ;;  %v2119_v16 = vsel %vm2118_vm14, %v2110_v11, -inf  ;;  %v2090_v34 = vadd.f32 %v2077_v30, %v2025_v29  ;;  %v2091_v38 = vadd.f32 %v2077_v30, %v2029_v35 }
 0x292   :  { %2120 = vmax.xlane.f32.xlu0 %v2119_v16  ;;  %v2105_v41 = vmax.f32 %v2089_v32, %v2097_v36  ;;  %v2125_v49 = vsel %vm2118_vm14, %v2112_v46, -inf }
 0x293   :  { %v2111_v15 = vadd.f32 %v2103_v12, %v11807_v13  ;;  %v2098_v39 = vmul.f32 0.2, %v2090_v34  ;;  %v2099_v42 = vmul.f32 0.2, %v2091_v38 }
 0x294   :  { %v2113_v47 = vadd.f32 %v2105_v41, %v11807_v13 }
 0x295   :  { %v2122_v18 = vsel %vm2118_vm14, %v2111_v15, -inf  ;;  %v2106_v43 = vmax.f32 %v2090_v34, %v2098_v39  ;;  %v2107_v48 = vmax.f32 %v2091_v38, %v2099_v42 }
 0x296   :  { %2123 = vmax.xlane.f32.xlu1 %v2122_v18  ;;  %v2128_v51 = vsel %vm2118_vm14, %v2113_v47, -inf }
 0x297   :  { %v2114_v50 = vadd.f32 %v2106_v43, %v11804_v9  ;;  %v2115_v54 = vadd.f32 %v2107_v48, %v11807_v13 }
 0x299   :  { %v2131_v53 = vsel %vm2118_vm14, %v2114_v50, -inf  ;;  %v2134_v56 = vsel %vm2118_vm14, %v2115_v54, -inf }
 0x2a7   :  { %2039 = vbcast.lane.b32.xlu1 %v2033_v20, 264 }
 0x2a8   :  { %2035 = vbcast.lane.b32.xlu0 %v2033_v20, 256 }
 0x2c7   :  { %2126 = vmax.xlane.f32.xlu0 %v2125_v49 }
 0x2cb   :  { %2129 = vmax.xlane.f32.xlu1 %v2128_v51  ;;  %2132 = vmax.xlane.f32.xlu0 %v2131_v53 }
 0x2cf   :  { %2135 = vmax.xlane.f32.xlu0 %v2134_v56 }
 0x31f   :  { %v2121_v59 = vpop.xlane.xlu0 %2120 }
 0x320   :  { %v2143_v60 = vsub.f32 %v2110_v11, %v2121_v59 }
 0x322   :  { %v2151_v61 = vmul.f32 1.442695, %v2143_v60 }
 0x323   :  { %v2124_v62 = vpop.xlane.xlu1 %2123  ;;  %v2036_v2 = vpop.permute.xlu0 %2035 }
 0x324   :  { %v2144_v1 = vsub.f32 %v2111_v15, %v2124_v62  ;;  %11452 = vpow2.f32 %v2151_v61  ;;  %v2092_v5 = vadd.f32 %v2081_v63, %v2036_v2 }
 0x326   :  { %v2153_v6 = vmul.f32 1.442695, %v2144_v1  ;;  %v2100_v7 = vmul.f32 0.2, %v2092_v5 }
 0x327   :  { %v2040_v8 = vpop.permute.xlu1 %2039 }
 0x328   :  { %11454 = vpow2.f32 %v2153_v6  ;;  %v2093_v3 = vadd.f32 %v2081_v63, %v2040_v8  ;;  %v2108_v12 = vmax.f32 %v2092_v5, %v2100_v7 }
 0x32a   :  { %v2101_v16 = vmul.f32 0.2, %v2093_v3  ;;  %v2116_v18 = vadd.f32 %v2108_v12, %v11804_v9 }
 0x32c   :  { %v2109_v20 = vmax.f32 %v2093_v3, %v2101_v16  ;;  %v2137_v11 = vsel %vm2118_vm14, %v2116_v18, -inf }
 0x32d   :  { %2138 = vmax.xlane.f32.xlu1 %v2137_v11 }
 0x32e   :  { %v2117_v21 = vadd.f32 %v2109_v20, %v11807_v13  ;;  %v11453_v22 = vpop.eup %11452 }
 0x32f   :  { %v2167_v15 = vsel %vm2118_vm14, %v11453_v22, 0.0 }
 0x330   :  { %v2140_v23 = vsel %vm2118_vm14, %v2117_v21, -inf  ;;  %2168 = vadd.xlane.f32.xlu0 %v2167_v15 }
 0x331   :  { %2141 = vmax.xlane.f32.xlu1 %v2140_v23 }
 0x332   :  { %v11455_v24 = vpop.eup %11454 }
 0x333   :  { %v2170_v26 = vsel %vm2118_vm14, %v11455_v24, 0.0 }
 0x334   :  { %2171 = vadd.xlane.f32.xlu0 %v2170_v26 }
 0x342   :  { %2715 = vrot.lane.b32.xlu1 %v11725_v4, %s11553_s25 }
 0x354   :  { %v2127_v27 = vpop.xlane.xlu0 %2126 }
 0x355   :  { %v2145_v28 = vsub.f32 %v2112_v46, %v2127_v27 }
 0x357   :  { %v2155_v29 = vmul.f32 1.442695, %v2145_v28 }
 0x358   :  { %v2130_v30 = vpop.xlane.xlu1 %2129  ;;  %v2133_v38 = vpop.xlane.xlu0 %2132 }
 0x359   :  { %v2146_v32 = vsub.f32 %v2113_v47, %v2130_v30  ;;  %11456 = vpow2.f32 %v2155_v29  ;;  %v2147_v41 = vsub.f32 %v2114_v50, %v2133_v38 }
 0x35b   :  { %v2157_v33 = vmul.f32 1.442695, %v2146_v32  ;;  %v2159_v43 = vmul.f32 1.442695, %v2147_v41 }
 0x35c   :  { %v2136_v39 = vpop.xlane.xlu0 %2135 }
 0x35d   :  { %11458 = vpow2.f32 %v2157_v33  ;;  %v2148_v42 = vsub.f32 %v2115_v54, %v2136_v39 }
 0x35e   :  { %11460 = vpow2.f32 %v2159_v43 }
 0x35f   :  { %v2161_v46 = vmul.f32 1.442695, %v2148_v42 }
 0x361   :  { %11462 = vpow2.f32 %v2161_v46 }
 0x363   :  { %v11835_v34 = vpop.eup %11456 }
 0x364   :  { %v2173_v35 = vsel %vm2118_vm14, %v11835_v34, 0.0 }
 0x366   :  { %2174 = vadd.xlane.f32.xlu1 %v2173_v35 }
 0x367   :  { %v11839_v36 = vpop.eup %11458 }
 0x368   :  { %v2176_v37 = vsel %vm2118_vm14, %v11839_v36, 0.0  ;;  %v11847_v47 = vpop.eup %11460 }
 0x369   :  { %2177 = vadd.xlane.f32.xlu0 %v2176_v37  ;;  %v2179_v49 = vsel %vm2118_vm14, %v11847_v47, 0.0 }
 0x36b   :  { %v11849_v48 = vpop.eup %11462 }
 0x36c   :  { %v2182_v51 = vsel %vm2118_vm14, %v11849_v48, 0.0 }
 0x377   :  { %3229 = vrot.lane.b32.xlu1 %v11725_v4, %s11554_s26 }
 0x37f   :  { %2717 = vrot.lane.b32.xlu0 %v11720_v0, %s11553_s25 }
 0x39b   :  { %2180 = vadd.xlane.f32.xlu1 %v2179_v49 }
 0x39e   :  { %2183 = vadd.xlane.f32.xlu0 %v2182_v51 }
 0x3ba   :  { %v2139_v53 = vpop.xlane.xlu1 %2138 }
 0x3bb   :  { %v2149_v56 = vsub.f32 %v2116_v18, %v2139_v53 }
 0x3bd   :  { %v2163_v50 = vmul.f32 1.442695, %v2149_v56  ;;  %v2169_v54 = vpop.xlane.xlu0 %2168 }
 0x3be   :  { %11464 = vrcp.f32 %v2169_v54  ;;  %v2142_v57 = vpop.xlane.xlu1 %2141 }
 0x3bf   :  { %11466 = vpow2.f32 %v2163_v50  ;;  %v2150_v59 = vsub.f32 %v2117_v21, %v2142_v57 }
 0x3c1   :  { %v2165_v60 = vmul.f32 1.442695, %v2150_v59  ;;  %v2172_v61 = vpop.xlane.xlu0 %2171 }
 0x3c2   :  { %11468 = vrcp.f32 %v2172_v61 }
 0x3c3   :  { %11470 = vpow2.f32 %v2165_v60 }
 0x3c8   :  { %v11465_v62 = vpop.eup %11464 }
 0x3c9   :  { %v11855_v63 = vpop.eup %11466  ;;  %v2192_v1 = vmul.f32 %v11465_v62, %v11453_v22 }
 0x3ca   :  { %v2185_v2 = vsel %vm2118_vm14, %v11855_v63, 0.0 }
 0x3cb   :  { %2186 = vadd.xlane.f32.xlu1 %v2185_v2  ;;  %v2208_v5 = vsel %vm2118_vm14, %v2192_v1, 0 }
 0x3cc   :  { %v11469_v6 = vpop.eup %11468  ;;  %v2280_v7 = vand.u32 4294901760, %v2208_v5 }
 0x3cd   :  { %v11860_v8 = vpop.eup %11470  ;;  %v2194_v3 = vmul.f32 %v11469_v6, %v11455_v24 }
 0x3ce   :  { %v2188_v12 = vsel %vm2118_vm14, %v11860_v8, 0.0  ;;  %v2281_v16 = vsub.f32 %v2208_v5, %v2280_v7 }
 0x3cf   :  { %2189 = vadd.xlane.f32.xlu0 %v2188_v12  ;;  %v2211_v18 = vsel %vm2118_vm14, %v2194_v3, 0 }
 0x3d0   :  { %v2282_v20 = vand.u32 4294901760, %v2281_v16  ;;  %v2290_v11 = vand.u32 4294901760, %v2211_v18 }
 0x3d2   :  { %v2283_v21 = vsub.f32 %v2281_v16, %v2282_v20  ;;  %v2291_v22 = vsub.f32 %v2211_v18, %v2290_v11 }
 0x3d4   :  { %v2284_v15 = vand.u32 4294901760, %v2283_v21  ;;  %v2292_v23 = vand.u32 4294901760, %v2291_v22 }
 0x3d6   :  { %10169 = vmatprep.mubr.f32.mxu1 %v2284_v15  ;;  %v2293_v26 = vsub.f32 %v2291_v22, %v2292_v23 }
 0x3d8   :  { %v2294_v27 = vand.u32 4294901760, %v2293_v26 }
 0x3da   :  { %10170 = vmatmul.mubr.f32.vlgmr.msra.gmra.mrb[4].mxu1 %v2294_v27 }
 0x3db   :  { %10898 = vmatpush3.bf16.msra.mxu1 %v11744_v40  ;;  %10176 = vmatprep.mubr.f32.mxu1 %v2280_v7  ;;  %v2716_v40 = vpop.permute.xlu1 %2715 }
 0x3dc   :  { %10900 = vmatprep.subr.bf16.mxu1 %v11738_v25  ;;  %3743 = vrot.lane.b32.xlu1 %v11725_v4, %s11555_s27  ;;  %v2728_v4 = vand.u32 4294901760, %v2716_v40 }
 0x3de   :  { %v2816_v28 = vsub.f32 %v2716_v40, %v2728_v4 }
 0x3e0   :  { %3745 = vrot.lane.b32.xlu1 %v11720_v0, %s11555_s27  ;;  %v2817_v29 = vand.u32 4294901760, %v2816_v28 }
 0x3e2   :  { %10177 = vmatmul.mubr.f32.vlgmr.msra.gmra.mrb[4].mxu1 %v2290_v11  ;;  %v2818_v37 = vsub.f32 %v2816_v28, %v2817_v29 }
 0x3e3   :  { %10902 = vmatpush3.bf16.msra.mxu1 %v11738_v25  ;;  %10183 = vmatprep.mubr.f32.mxu1 %v2281_v16 }
 0x3e4   :  { %10904 = vmatprep.subr.bf16.mxu1 %v11733_v14  ;;  %v2819_v46 = vand.u32 4294901760, %v2818_v37 }
 0x3e5   :  { %3231 = vrot.lane.b32.xlu0 %v11720_v0, %s11554_s26 }
 0x3ea   :  { %10184 = vmatmul.mubr.f32.vlgmr.msra.gmra.mrb[4].mxu1 %v2291_v22 }
 0x3eb   :  { %10906 = vmatpush3.bf16.msra.mxu1 %v11733_v14  ;;  %10190 = vmatprep.mubr.f32.mxu1 %v2282_v20 }
 0x3ec   :  { %10908 = vmatprep.subr.bf16.mxu1 %v11742_v31 }
 0x3f2   :  { %10191 = vmatmul.mubr.f32.vlgmr.msra.gmra.mrb[4].mxu1 %v2292_v23 }
 0x3f3   :  { %10910 = vmatpush3.bf16.msra.mxu1 %v11742_v31  ;;  %v2175_v24 = vpop.xlane.xlu1 %2174  ;;  %10197 = vmatprep.mubr.f32.mxu1 %v2280_v7 }
 0x3f4   :  { %11472 = vrcp.f32 %v2175_v24  ;;  %10912 = vmatprep.subr.bf16.mxu1 %v11733_v14 }
 0x3f6   :  { %v2178_v25 = vpop.xlane.xlu0 %2177 }
 0x3f7   :  { %11474 = vrcp.f32 %v2178_v25  ;;  %v3230_v2 = vpop.permute.xlu1 %3229 }
 0x3f8   :  { %v3242_v27 = vand.u32 4294901760, %v3230_v2 }
 0x3fa   :  { %v2718_v0 = vpop.permute.xlu0 %2717  ;;  %10198 = vmatmul.mubr.f32.vlgmr.msra.gmra.mrb[4].mxu1 %v2290_v11 }
 0x3fb   :  { %v2731_v30 = vand.u32 4294901760, %v2718_v0  ;;  %10914 = vmatpush3.bf16.msra.mxu1 %v11733_v14  ;;  %10204 = vmatprep.mubr.f32.mxu1 %v2280_v7 }
 0x3fd   :  { %v10915_v32 = vpack.c.bf16 %v2731_v30, %v2728_v4  ;;  %v2823_v33 = vsub.f32 %v2718_v0, %v2731_v30 }
 0x3fe   :  { %v11473_v35 = vpop.eup %11472 }
 0x3ff   :  { %v2824_v31 = vand.u32 4294901760, %v2823_v33  ;;  %10916 = vmatprep.subr.bf16.mxu1 %v10915_v32  ;;  %v2196_v38 = vmul.f32 %v11473_v35, %v11835_v34  ;;  %v10923_v62 = vpack.c.bf16 %v2823_v33, %v2816_v28  ;;  %v11902_v28 = vsub.f32 %v3230_v2, %v3242_v27 }
 0x401   :  { %v11475_v39 = vpop.eup %11474  ;;  %v2825_v41 = vsub.f32 %v2823_v33, %v2824_v31  ;;  %v2722_v43 = vsel %vm2118_vm14, %v2196_v38, 0  ;;  %v10931_v1 = vpack.c.bf16 %v2824_v31, %v2817_v29  ;;  %v3331_v37 = vand.u32 4294901760, %v11902_v28 }
 0x402   :  { %v2198_v42 = vmul.f32 %v11475_v39, %v11839_v36  ;;  %10205 = vmatmul.mubr.f32.vlgmr.msra.gmra.mrb[4].mxu1 %v2290_v11  ;;  %v2794_v51 = vand.u32 4294901760, %v2722_v43 }
 0x403   :  { %v2826_v49 = vand.u32 4294901760, %v2825_v41  ;;  %10918 = vmatpush3.bf16.msra.mxu1 %v10915_v32 }
 0x404   :  { %v2725_v14 = vsel %vm2118_vm14, %v2198_v42, 0  ;;  %v2795_v56 = vsub.f32 %v2722_v43, %v2794_v51 }
 0x405   :  { %v10919_v53 = vpack.c.bf16 %v2826_v49, %v2819_v46  ;;  %v2804_v50 = vand.u32 4294901760, %v2725_v14 }
 0x406   :  { %v2796_v54 = vand.u32 4294901760, %v2795_v56 }
 0x407   :  { %10920 = vmatprep.subr.bf16.mxu1 %v10919_v53  ;;  %v2805_v57 = vsub.f32 %v2725_v14, %v2804_v50  ;;  %v3332_v14 = vsub.f32 %v11902_v28, %v3331_v37 }
 0x408   :  { %v2797_v34 = vsub.f32 %v2795_v56, %v2796_v54 }
 0x409   :  { %v2806_v59 = vand.u32 4294901760, %v2805_v57 }
 0x40a   :  { %v2798_v60 = vand.u32 4294901760, %v2797_v34 }
 0x40b   :  { %v2807_v61 = vsub.f32 %v2805_v57, %v2806_v59 }
 0x40c   :  { %10211 = vmatprep.mubr.f32.mxu1 %v2798_v60 }
 0x40d   :  { %v2808_v36 = vand.u32 4294901760, %v2807_v61 }
 0x40f   :  { %10212 = vmatmul.mubr.f32.vlgmr.msra.gmra.mrb[6].mxu1 %v2808_v36 }
 0x410   :  { %10922 = vmatpush3.bf16.msra.mxu1 %v10919_v53  ;;  %10218 = vmatprep.mubr.f32.mxu1 %v2794_v51 }
 0x411   :  { %10924 = vmatprep.subr.bf16.mxu1 %v10923_v62 }
 0x417   :  { %10219 = vmatmul.mubr.f32.vlgmr.msra.gmra.mrb[6].mxu1 %v2804_v50 }
 0x418   :  { %10926 = vmatpush3.bf16.msra.mxu1 %v10923_v62  ;;  %10225 = vmatprep.mubr.f32.mxu1 %v2795_v56  ;;  %v3333_v62 = vand.u32 4294901760, %v3332_v14 }
 0x419   :  { %10928 = vmatprep.subr.bf16.mxu1 %v10915_v32 }
 0x41f   :  { %10226 = vmatmul.mubr.f32.vlgmr.msra.gmra.mrb[6].mxu1 %v2805_v57 }
 0x420   :  { %10930 = vmatpush3.bf16.msra.mxu1 %v10915_v32  ;;  %10232 = vmatprep.mubr.f32.mxu1 %v2796_v54 }
 0x421   :  { %10932 = vmatprep.subr.bf16.mxu1 %v10931_v1 }
 0x427   :  { %10233 = vmatmul.mubr.f32.vlgmr.msra.gmra.mrb[6].mxu1 %v2806_v59 }
 0x428   :  { %10934 = vmatpush3.bf16.msra.mxu1 %v10931_v1  ;;  %10239 = vmatprep.mubr.f32.mxu1 %v2794_v51  ;;  %v2181_v5 = vpop.xlane.xlu1 %2180 }
 0x429   :  { %10936 = vmatprep.subr.bf16.mxu1 %v10915_v32  ;;  %11476 = vrcp.f32 %v2181_v5 }
 0x42b   :  { %v2184_v21 = vpop.xlane.xlu0 %2183 }
 0x42c   :  { %11478 = vrcp.f32 %v2184_v21 }
 0x42f   :  { %10240 = vmatmul.mubr.f32.vlgmr.msra.gmra.mrb[6].mxu1 %v2804_v50 }
 0x430   :  { %10938 = vmatpush3.bf16.msra.mxu1 %v10915_v32  ;;  %10246 = vmatprep.mubr.f32.mxu1 %v2794_v51 }
 0x433   :  { %v11477_v6 = vpop.eup %11476 }
 0x434   :  { %v2200_v7 = vmul.f32 %v11477_v6, %v11847_v47 }
 0x436   :  { %v3236_v3 = vsel %vm2118_vm14, %v2200_v7, 0  ;;  %v11479_v22 = vpop.eup %11478 }
 0x437   :  { %10247 = vmatmul.mubr.f32.vlgmr.msra.gmra.mrb[6].mxu1 %v2804_v50  ;;  %v11886_v12 = vand.u32 4294901760, %v3236_v3  ;;  %v2202_v47 = vmul.f32 %v11479_v22, %v11849_v48 }
 0x439   :  { %v11889_v16 = vsub.f32 %v3236_v3, %v11886_v12  ;;  %v3239_v15 = vsel %vm2118_vm14, %v2202_v47, 0 }
 0x43a   :  { %v11897_v23 = vand.u32 4294901760, %v3239_v15 }
 0x43b   :  { %v3310_v18 = vand.u32 4294901760, %v11889_v16 }
 0x43c   :  { %v11900_v40 = vsub.f32 %v3239_v15, %v11897_v23 }
 0x43d   :  { %v3311_v20 = vsub.f32 %v11889_v16, %v3310_v18 }
 0x43e   :  { %v3320_v48 = vand.u32 4294901760, %v11900_v40 }
 0x43f   :  { %v3312_v11 = vand.u32 4294901760, %v3311_v20 }
 0x440   :  { %v3321_v42 = vsub.f32 %v11900_v40, %v3320_v48 }
 0x441   :  { %10253 = vmatprep.mubr.f32.mxu0 %v3312_v11 }
 0x442   :  { %v3322_v54 = vand.u32 4294901760, %v3321_v42 }
 0x458   :  { %v2187_v26 = vpop.xlane.xlu1 %2186 }
 0x459   :  { %11480 = vrcp.f32 %v2187_v26 }
 0x45c   :  { %v3744_v4 = vpop.permute.xlu1 %3743  ;;  %v2190_v24 = vpop.xlane.xlu0 %2189 }
 0x45d   :  { %v3756_v25 = vand.u32 4294901760, %v3744_v4  ;;  %11482 = vrcp.f32 %v2190_v24 }
 0x45f   :  { %v11904_v0 = vsub.f32 %v3744_v4, %v3756_v25 }
 0x460   :  { %v3746_v29 = vpop.permute.xlu1 %3745  ;;  %v3232_v30 = vpop.permute.xlu0 %3231 }
 0x461   :  { %v3845_v32 = vand.u32 4294901760, %v11904_v0  ;;  %v3759_v33 = vand.u32 4294901760, %v3746_v29  ;;  %v3245_v35 = vand.u32 4294901760, %v3232_v30 }
 0x463   :  { %v11481_v31 = vpop.eup %11480  ;;  %v11909_v38 = vpack.c.bf16 %v3759_v33, %v3756_v25  ;;  %v11911_v39 = vsub.f32 %v3746_v29, %v3759_v33  ;;  %v11913_v41 = vpack.c.bf16 %v3245_v35, %v3242_v27  ;;  %v3337_v46 = vsub.f32 %v3232_v30, %v3245_v35  ;;  %v4290_v25 = vld [vmem:[%s12401_s2 + $0x18] sm:$0xff]  ;;  %v4292_v30 = vld [vmem:[%s12401_s2 + $0x28] sm:$0xff] }
 0x464   :  { %v2204_v43 = vmul.f32 %v11481_v31, %v11855_v63  ;;  %v3846_v49 = vsub.f32 %v11904_v0, %v3845_v32 }
 0x465   :  { %v3852_v51 = vand.u32 4294901760, %v11911_v39  ;;  %10940 = vmatprep.subr.bf16.mxu0 %v11913_v41  ;;  %10964 = vmatprep.subr.bf16.mxu1 %v11909_v38  ;;  %v3338_v53 = vand.u32 4294901760, %v3337_v46  ;;  %v10971_v26 = vpack.c.bf16 %v11911_v39, %v11904_v0  ;;  %v4303_v0 = vand.u32 4294901760, %v4290_v25 }
 0x466   :  { %10942 = vmatpush3.bf16.msra.mxu0 %v11913_v41  ;;  %10966 = vmatpush3.bf16.msra.mxu1 %v11909_v38  ;;  %v3750_v63 = vsel %vm2118_vm14, %v2204_v43, 0  ;;  %v3847_v60 = vand.u32 4294901760, %v3846_v49 }
 0x467   :  { %v11483_v56 = vpop.eup %11482  ;;  %v3853_v50 = vsub.f32 %v11911_v39, %v3852_v51  ;;  %v11930_v57 = vand.u32 4294901760, %v3750_v63  ;;  %v3339_v59 = vsub.f32 %v3337_v46, %v3338_v53  ;;  %v10955_v27 = vpack.c.bf16 %v3338_v53, %v3331_v37 }
 0x468   :  { %v2206_v34 = vmul.f32 %v11483_v56, %v11860_v8  ;;  %v10947_v8 = vpack.c.bf16 %v3337_v46, %v11902_v28  ;;  %v10979_v4 = vpack.c.bf16 %v3852_v51, %v3845_v32  ;;  %v4291_v28 = vld [vmem:[%s12401_s2 + $0x20] sm:$0xff]  ;;  %v4293_v32 = vld [vmem:[%s12401_s2 + $0x30] sm:$0xff]  ;;  %v4393_v33 = vsub.f32 %v4290_v25, %v4303_v0 }
 0x469   :  { %10254 = vmatmul.mubr.f32.vlgmr.msra.gmra.mrb[4].mxu0 %v3322_v54  ;;  %v3854_v61 = vand.u32 4294901760, %v3853_v50  ;;  %v3823_v36 = vsub.f32 %v3750_v63, %v11930_v57  ;;  %v3340_v1 = vand.u32 4294901760, %v3339_v59  ;;  %v4309_v37 = vand.u32 4294901760, %v4292_v30 }
 0x46a   :  { %10260 = vmatprep.mubr.f32.mxu0 %v11886_v12  ;;  %v3753_v2 = vsel %vm2118_vm14, %v2206_v34, 0  ;;  %v4312_v31 = vand.u32 4294901760, %v4293_v32 }
 0x46b   :  { %v10967_v5 = vpack.c.bf16 %v3854_v61, %v3847_v60  ;;  %v3824_v6 = vand.u32 4294901760, %v3823_v36  ;;  %v3832_v7 = vand.u32 4294901760, %v3753_v2  ;;  %v10943_v3 = vpack.c.bf16 %v3340_v1, %v3333_v62 }
 0x46c   :  { %v4407_v49 = vsub.f32 %v4292_v30, %v4309_v37  ;;  %v4414_v51 = vsub.f32 %v4293_v32, %v4312_v31 }
 0x46d   :  { %10968 = vmatprep.subr.bf16.mxu1 %v10967_v5  ;;  %v3825_v20 = vsub.f32 %v3823_v36, %v3824_v6  ;;  %v3833_v11 = vsub.f32 %v3753_v2, %v3832_v7  ;;  %10944 = vmatprep.subr.bf16.mxu0 %v10943_v3 }
 0x46e   :  { %10946 = vmatpush3.bf16.msra.mxu0 %v10943_v3  ;;  %v4408_v56 = vand.u32 4294901760, %v4407_v49  ;;  %v4415_v50 = vand.u32 4294901760, %v4414_v51  ;;  %v11007_v62 = vpack.c.bf16 %v4414_v51, %v4407_v49 }
 0x46f   :  { %v3826_v21 = vand.u32 4294901760, %v3825_v20  ;;  %v3834_v22 = vand.u32 4294901760, %v3833_v11  ;;  %10948 = vmatprep.subr.bf16.mxu0 %v10947_v8 }
 0x470   :  { %v4416_v34 = vsub.f32 %v4414_v51, %v4415_v50  ;;  %v11023_v2 = vpack.c.bf16 %v4415_v50, %v4408_v56 }
 0x471   :  { %10295 = vmatprep.mubr.f32.mxu1 %v3826_v21  ;;  %v3835_v47 = vsub.f32 %v3833_v11, %v3834_v22  ;;  %10261 = vmatmul.mubr.f32.vlgmr.msra.gmra.mrb[4].mxu0 %v11897_v23 }
 0x472   :  { %10950 = vmatpush3.bf16.msra.mxu0 %v10947_v8  ;;  %10267 = vmatprep.mubr.f32.mxu0 %v11889_v16  ;;  %v4417_v60 = vand.u32 4294901760, %v4416_v34 }
 0x473   :  { %v3836_v15 = vand.u32 4294901760, %v3835_v47  ;;  %10952 = vmatprep.subr.bf16.mxu0 %v11913_v41 }
 0x475   :  { %10296 = vmatmul.mubr.f32.vlgmr.msra.gmra.mrb[8].mxu1 %v3836_v15 }
 0x476   :  { %10970 = vmatpush3.bf16.msra.mxu1 %v10967_v5  ;;  %10302 = vmatprep.mubr.f32.mxu1 %v11930_v57 }
 0x477   :  { %10972 = vmatprep.subr.bf16.mxu1 %v10971_v26 }
 0x479   :  { %10268 = vmatmul.mubr.f32.vlgmr.msra.gmra.mrb[4].mxu0 %v11900_v40 }
 0x47a   :  { %10954 = vmatpush3.bf16.msra.mxu0 %v11913_v41  ;;  %10274 = vmatprep.mubr.f32.mxu0 %v3310_v18 }
 0x47b   :  { %10956 = vmatprep.subr.bf16.mxu0 %v10955_v27 }
 0x47d   :  { %10303 = vmatmul.mubr.f32.vlgmr.msra.gmra.mrb[8].mxu1 %v3832_v7 }
 0x47e   :  { %10974 = vmatpush3.bf16.msra.mxu1 %v10971_v26  ;;  %10309 = vmatprep.mubr.f32.mxu1 %v3823_v36 }
 0x47f   :  { %10976 = vmatprep.subr.bf16.mxu1 %v11909_v38 }
 0x481   :  { %10275 = vmatmul.mubr.f32.vlgmr.msra.gmra.mrb[4].mxu0 %v3320_v48  ;;  %v4306_v48 = vand.u32 4294901760, %v4291_v28 }
 0x482   :  { %10958 = vmatpush3.bf16.msra.mxu0 %v10955_v27  ;;  %10281 = vmatprep.mubr.f32.mxu0 %v11886_v12 }
 0x483   :  { %10960 = vmatprep.subr.bf16.mxu0 %v11913_v41  ;;  %v11976_v29 = vpack.c.bf16 %v4306_v48, %v4303_v0  ;;  %v4400_v35 = vsub.f32 %v4291_v28, %v4306_v48 }
 0x485   :  { %10310 = vmatmul.mubr.f32.vlgmr.msra.gmra.mrb[8].mxu1 %v3833_v11  ;;  %v4401_v39 = vand.u32 4294901760, %v4400_v35  ;;  %v11003_v36 = vpack.c.bf16 %v4400_v35, %v4393_v33 }
 0x486   :  { %10978 = vmatpush3.bf16.msra.mxu1 %v11909_v38  ;;  %10316 = vmatprep.mubr.f32.mxu1 %v3824_v6 }
 0x487   :  { %10980 = vmatprep.subr.bf16.mxu1 %v10979_v4  ;;  %v4402_v46 = vsub.f32 %v4400_v35, %v4401_v39  ;;  %v4294_v35 = vld [vmem:[%s12401_s2 + $0x38] sm:$0xf] }
 0x489   :  { %10282 = vmatmul.mubr.f32.vlgmr.msra.gmra.mrb[4].mxu0 %v11897_v23  ;;  %v4403_v63 = vand.u32 4294901760, %v4402_v46 }
 0x48a   :  { %10962 = vmatpush3.bf16.msra.mxu0 %v11913_v41  ;;  %10288 = vmatprep.mubr.f32.mxu0 %v11886_v12  ;;  %v11986_v41 = vpack.c.bf16 %v4312_v31, %v4309_v37  ;;  %v5299_v37 = vsel %vm41_vm1, %v4294_v35, 0 }
 0x48b   :  { %10988 = vmatprep.subr.bf16.mxu0 %v11976_v29 }
 0x48d   :  { %10317 = vmatmul.mubr.f32.vlgmr.msra.gmra.mrb[8].mxu1 %v3834_v22 }
 0x48e   :  { %10982 = vmatpush3.bf16.msra.mxu1 %v10979_v4  ;;  %10323 = vmatprep.mubr.f32.mxu1 %v11930_v57 }
 0x48f   :  { %10984 = vmatprep.subr.bf16.mxu1 %v11909_v38 }
 0x491   :  { %10289 = vmatmul.mubr.f32.vlgmr.msra.gmra.mrb[4].mxu0 %v11897_v23 }
 0x492   :  { %10990 = vmatpush3.bf16.msra.mxu0 %v11976_v29 }
 0x493   :  { %10992 = vmatprep.subr.bf16.mxu0 %v11986_v41 }
 0x495   :  { %10324 = vmatmul.mubr.f32.vlgmr.msra.gmra.mrb[8].mxu1 %v3832_v7 }
 0x496   :  { %10986 = vmatpush3.bf16.msra.mxu1 %v11909_v38  ;;  %10330 = vmatprep.mubr.f32.mxu1 %v11930_v57  ;;  %v4394_v38 = vand.u32 4294901760, %v4393_v33  ;;  %v4409_v57 = vsub.f32 %v4407_v49, %v4408_v56 }
 0x497   :  { %11035 = vmatprep.subr.bf16.mxu1 %v11549_v55  ;;  %10994 = vmatpush3.bf16.msra.mxu0 %v11986_v41 }
 0x498   :  { %v4395_v43 = vsub.f32 %v4393_v33, %v4394_v38  ;;  %v4410_v59 = vand.u32 4294901760, %v4409_v57  ;;  %v11019_v1 = vpack.c.bf16 %v4401_v39, %v4394_v38  ;;  %v4295_v33 = vld [vmem:[%s12401_s2 + $0x40] sm:$0xf]  ;;  %v12021_v38 = vand.u32 4294901760, %v5299_v37 }
 0x49a   :  { %v4396_v53 = vand.u32 4294901760, %v4395_v43  ;;  %v10999_v61 = vpack.c.bf16 %v4417_v60, %v4410_v59 }
 0x49c   :  { %v10995_v54 = vpack.c.bf16 %v4403_v63, %v4396_v53 }
 0x49d   :  { %10331 = vmatmul.mubr.f32.vlgmr.msra.gmra.mrb[8].mxu1 %v3832_v7 }
 0x49e   :  { %10403 = vmatprep.mubr.msk.f32.mxu1 %vm11550_vm7, %v11548_v17  ;;  %10996 = vmatprep.subr.bf16.mxu0 %v10995_v54 }
 0x4d5   :  { %v10206_v12 = vpop.f32.mrb[4].mxu1 }
 0x4d6   :  { %v2705_v16 = vpop.f32.mrb[5].mxu1 }
 0x50a   :  { %v10248_v18 = vpop.f32.mrb[6].mxu1 }
 0x50b   :  { %v3219_v40 = vpop.f32.mrb[7].mxu1 }
 0x564   :  { %v10290_v24 = vpop.f32.mrb[4].mxu0 }
 0x565   :  { %4269 = vrot.lane.b32.xlu1 %v10290_v24, %s11556_s28  ;;  %v3733_v23 = vpop.f32.mrb[5].mxu0 }
 0x566   :  { %4267 = vrot.lane.b32.xlu0 %v3733_v23, %s11556_s28 }
 0x569   :  { %4261 = vrot.lane.b32.xlu1 %v10248_v18, %s11557_s6 }
 0x56a   :  { %4259 = vrot.lane.b32.xlu0 %v3219_v40, %s11557_s6 }
 0x570   :  { %v10332_v42 = vpop.f32.mrb[8].mxu1 }
 0x571   :  { %v4247_v14 = vpop.f32.mrb[9].mxu1  ;;  %4277 = vrot.lane.b32.xlu1 %v10332_v42, %s11558_s11 }
 0x572   :  { %4275 = vrot.lane.b32.xlu0 %v4247_v14, %s11558_s11 }
 0x5d7   :  { %v4270_v5 = vpop.permute.xlu1 %4269 }
 0x5d8   :  { %v4268_v6 = vpop.permute.xlu0 %4267 }
 0x5db   :  { %v4262_v7 = vpop.permute.xlu1 %4261 }
 0x5dc   :  { %v4260_v3 = vpop.permute.xlu0 %4259  ;;  %v4282_v20 = vsel %vm571_vm0, %v10206_v12, %v4262_v7 }
 0x5dd   :  { %v4281_v11 = vsel %vm571_vm0, %v2705_v16, %v4260_v3  ;;  %v4284_v8 = vsel %vm2118_vm14, %v4282_v20, %v4270_v5 }
 0x5de   :  { %v4283_v47 = vsel %vm2118_vm14, %v4281_v11, %v4268_v6 }
 0x5e3   :  { %v4278_v21 = vpop.permute.xlu1 %4277 }
 0x5e4   :  { %v4287_v22 = vsel %vm4285_vm15, %v4284_v8, %v4278_v21  ;;  %v4276_v15 = vpop.permute.xlu0 %4275 }
 0x5e5   :  { %v4289_v26 = vmax.f32 %v4287_v22, 0.0  ;;  %v4286_v27 = vsel %vm4285_vm15, %v4283_v47, %v4276_v15 }
 0x5e6   :  { %v4288_v4 = vmax.f32 %v4286_v27, 0.0 }
 0x5e7   :  { %v4300_v18 = vsel %vm41_vm1, %v4289_v26, 0 }
 0x5e8   :  { %v4381_v40 = vand.u32 4294901760, %v4300_v18  ;;  %v4297_v12 = vsel %vm41_vm1, %v4288_v4, 0 }
 0x5e9   :  { %v4371_v24 = vand.u32 4294901760, %v4297_v12 }
 0x5ea   :  { %v4382_v16 = vsub.f32 %v4300_v18, %v4381_v40 }
 0x5eb   :  { %v4372_v23 = vsub.f32 %v4297_v12, %v4371_v24 }
 0x5ec   :  { %v4383_v25 = vand.u32 4294901760, %v4382_v16 }
 0x5ed   :  { %v4373_v28 = vand.u32 4294901760, %v4372_v23 }
 0x5ee   :  { %v4384_v0 = vsub.f32 %v4382_v16, %v4383_v25 }
 0x5ef   :  { %v4374_v48 = vsub.f32 %v4372_v23, %v4373_v28 }
 0x5f0   :  { %v4385_v32 = vand.u32 4294901760, %v4384_v0 }
 0x5f1   :  { %v4375_v30 = vand.u32 4294901760, %v4374_v48 }
 0x5f3   :  { %10341 = vmatprep.mubr.f32.mxu0 %v4375_v30 }
 0x5f4   :  { %10342 = vmatmul.mubr.f32.vlgmr.msra.gmra.mrb[6].mxu0 %v4385_v32 }
 0x5f5   :  { %10998 = vmatpush3.bf16.msra.mxu0 %v10995_v54  ;;  %10352 = vmatprep.mubr.f32.mxu0 %v4371_v24 }
 0x5f6   :  { %11000 = vmatprep.subr.bf16.mxu0 %v10999_v61 }
 0x5f9   :  { %11002 = vmatpush3.bf16.msra.mxu0 %v10999_v61 }
 0x5fa   :  { %11004 = vmatprep.subr.bf16.mxu0 %v11003_v36 }
 0x5fc   :  { %10353 = vmatmul.mubr.f32.vlgmr.msra.gmra.mrb[6].mxu0 %v4381_v40 }
 0x5fd   :  { %11006 = vmatpush3.bf16.msra.mxu0 %v11003_v36  ;;  %10363 = vmatprep.mubr.f32.mxu0 %v4372_v23 }
 0x5fe   :  { %11008 = vmatprep.subr.bf16.mxu0 %v11007_v62 }
 0x601   :  { %11010 = vmatpush3.bf16.msra.mxu0 %v11007_v62 }
 0x602   :  { %11012 = vmatprep.subr.bf16.mxu0 %v11976_v29 }
 0x604   :  { %10364 = vmatmul.mubr.f32.vlgmr.msra.gmra.mrb[6].mxu0 %v4382_v16 }
 0x605   :  { %11014 = vmatpush3.bf16.msra.mxu0 %v11976_v29  ;;  %10374 = vmatprep.mubr.f32.mxu0 %v4373_v28 }
 0x606   :  { %11016 = vmatprep.subr.bf16.mxu0 %v11986_v41 }
 0x609   :  { %11018 = vmatpush3.bf16.msra.mxu0 %v11986_v41 }
 0x60a   :  { %11020 = vmatprep.subr.bf16.mxu0 %v11019_v1 }
 0x60c   :  { %10375 = vmatmul.mubr.f32.vlgmr.msra.gmra.mrb[6].mxu0 %v4383_v25 }
 0x60d   :  { %11022 = vmatpush3.bf16.msra.mxu0 %v11019_v1  ;;  %10385 = vmatprep.mubr.f32.mxu0 %v4371_v24 }
 0x60e   :  { %11024 = vmatprep.subr.bf16.mxu0 %v11023_v2 }
 0x611   :  { %11026 = vmatpush3.bf16.msra.mxu0 %v11023_v2 }
 0x612   :  { %11028 = vmatprep.subr.bf16.mxu0 %v11976_v29 }
 0x614   :  { %10386 = vmatmul.mubr.f32.vlgmr.msra.gmra.mrb[6].mxu0 %v4381_v40 }
 0x615   :  { %11030 = vmatpush3.bf16.msra.mxu0 %v11976_v29  ;;  %10396 = vmatprep.mubr.f32.mxu0 %v4371_v24  ;;  %v4831_v29 = vsel %vm41_vm1, %v4295_v33, 0 }
 0x616   :  { %11032 = vmatprep.subr.bf16.mxu0 %v11986_v41  ;;  %v12019_v31 = vand.u32 4294901760, %v4831_v29 }
 0x618   :  { %v12024_v39 = vsub.f32 %v4831_v29, %v12019_v31 }
 0x619   :  { %11034 = vmatpush3.bf16.msra.mxu0 %v11986_v41  ;;  %v12027_v41 = vsub.f32 %v5299_v37, %v12021_v38 }
 0x61a   :  { %11053 = vmatprep.subr.bf16.mxu0 %v11549_v55  ;;  %v4908_v51 = vand.u32 4294901760, %v12024_v39 }
 0x61b   :  { %v5370_v56 = vand.u32 4294901760, %v12027_v41 }
 0x61c   :  { %10397 = vmatmul.mubr.f32.vlgmr.msra.gmra.mrb[6].mxu0 %v4381_v40  ;;  %v4909_v36 = vsub.f32 %v12024_v39, %v4908_v51 }
 0x61d   :  { %10445 = vmatprep.mubr.msk.f32.mxu0 %vm11550_vm7, %v11548_v17  ;;  %v5371_v2 = vsub.f32 %v12027_v41, %v5370_v56 }
 0x61e   :  { %v4910_v26 = vand.u32 4294901760, %v4909_v36 }
 0x61f   :  { %v5372_v4 = vand.u32 4294901760, %v5371_v2 }
 0x6ef   :  { %v12029_v42 = vpop.f32.mrb[6].mxu0 }
 0x6f0   :  { %v4837_v43 = vsel %vm41_vm1, %v12029_v42, 0  ;;  %v5979_v46 = vand.u32 4294901760, %v12029_v42  ;;  %v12034_v49 = vpop.f32.mrb[7].mxu0 }
 0x6f1   :  { %v4843_v14 = vand.u32 4294901760, %v4837_v43  ;;  %v4834_v53 = vsel %vm41_vm1, %v12034_v49, 0  ;;  %v5976_v63 = vand.u32 4294901760, %v12034_v49 }
 0x6f2   :  { %v4840_v50 = vand.u32 4294901760, %v4834_v53  ;;  %v6071_v54 = vsub.f32 %v12029_v42, %v5979_v46 }
 0x6f3   :  { %v4925_v57 = vsub.f32 %v4837_v43, %v4843_v14  ;;  %v12042_v34 = vpack.c.bf16 %v5979_v46, %v5976_v63  ;;  %v6064_v59 = vsub.f32 %v12034_v49, %v5976_v63 }
 0x6f4   :  { %v11036_v60 = vpack.c.bf16 %v4843_v14, %v4840_v50  ;;  %v4918_v61 = vsub.f32 %v4834_v53, %v4840_v50  ;;  %v6072_v62 = vand.u32 4294901760, %v6071_v54 }
 0x6f5   :  { %v4926_v1 = vand.u32 4294901760, %v4925_v57  ;;  %v6065_v5 = vand.u32 4294901760, %v6064_v59  ;;  %v12047_v6 = vpack.c.bf16 %v6071_v54, %v6064_v59 }
 0x6f6   :  { %11037 = vmatpush3.bf16.xpose.msra.mxu1 %v11036_v60  ;;  %11055 = vmatpush3.bf16.xpose.msra.mxu0 %v11036_v60  ;;  %v4919_v7 = vand.u32 4294901760, %v4918_v61  ;;  %v11042_v3 = vpack.c.bf16 %v4925_v57, %v4918_v61  ;;  %v6073_v20 = vsub.f32 %v6071_v54, %v6072_v62 }
 0x6f7   :  { %11038 = vmatprep.subr.bf16.mxu1 %v11549_v55  ;;  %11056 = vmatprep.subr.bf16.mxu0 %v11549_v55  ;;  %v4927_v11 = vsub.f32 %v4925_v57, %v4926_v1  ;;  %v6066_v8 = vsub.f32 %v6064_v59, %v6065_v5  ;;  %v12051_v21 = vpack.c.bf16 %v6072_v62, %v6065_v5 }
 0x6f8   :  { %v4920_v22 = vsub.f32 %v4918_v61, %v4919_v7  ;;  %v11048_v47 = vpack.c.bf16 %v4926_v1, %v4919_v7  ;;  %v6074_v15 = vand.u32 4294901760, %v6073_v20 }
 0x6f9   :  { %v4928_v27 = vand.u32 4294901760, %v4927_v11  ;;  %v6067_v18 = vand.u32 4294901760, %v6066_v8 }
 0x6fa   :  { %v4921_v40 = vand.u32 4294901760, %v4920_v22 }
 0x6fb   :  { %v12053_v12 = vpack.c.bf16 %v6074_v15, %v6067_v18 }
 0x6fc   :  { %v11039_v24 = vpack.c.bf16 %v4928_v27, %v4921_v40 }
 0x6fd   :  { %10404 = vmatmul.mubr.f32.vlgmr.msra.gmra.mrb[10].mxu1 %v4910_v26  ;;  %10446 = vmatmul.mubr.f32.vlgmr.msra.gmra.mrb[8].mxu0 %v5372_v4 }
 0x6fe   :  { %11040 = vmatpush3.bf16.xpose.msra.mxu1 %v11039_v24  ;;  %11058 = vmatpush3.bf16.xpose.msra.mxu0 %v11039_v24 }
 0x6ff   :  { %10410 = vmatprep.mubr.msk.f32.mxu1 %vm11550_vm7, %v11548_v17  ;;  %11041 = vmatprep.subr.bf16.mxu1 %v11549_v55 }
 0x700   :  { %10452 = vmatprep.mubr.msk.f32.mxu0 %vm11550_vm7, %v11548_v17  ;;  %11059 = vmatprep.subr.bf16.mxu0 %v11549_v55 }
 0x705   :  { %10411 = vmatmul.mubr.f32.vlgmr.msra.gmra.mrb[10].mxu1 %v12019_v31  ;;  %10453 = vmatmul.mubr.f32.vlgmr.msra.gmra.mrb[8].mxu0 %v12021_v38 }
 0x706   :  { %11043 = vmatpush3.bf16.xpose.msra.mxu1 %v11042_v3  ;;  %11061 = vmatpush3.bf16.xpose.msra.mxu0 %v11042_v3 }
 0x707   :  { %10417 = vmatprep.mubr.msk.f32.mxu1 %vm11550_vm7, %v11548_v17  ;;  %11044 = vmatprep.subr.bf16.mxu1 %v11549_v55 }
 0x708   :  { %10459 = vmatprep.mubr.msk.f32.mxu0 %vm11550_vm7, %v11548_v17  ;;  %11062 = vmatprep.subr.bf16.mxu0 %v11549_v55 }
 0x70d   :  { %10418 = vmatmul.mubr.f32.vlgmr.msra.gmra.mrb[10].mxu1 %v12024_v39  ;;  %10460 = vmatmul.mubr.f32.vlgmr.msra.gmra.mrb[8].mxu0 %v12027_v41 }
 0x70e   :  { %11046 = vmatpush3.bf16.xpose.msra.mxu1 %v11036_v60  ;;  %11064 = vmatpush3.bf16.xpose.msra.mxu0 %v11036_v60 }
 0x70f   :  { %10424 = vmatprep.mubr.msk.f32.mxu1 %vm11550_vm7, %v11548_v17  ;;  %11047 = vmatprep.subr.bf16.mxu1 %v11549_v55 }
 0x710   :  { %10466 = vmatprep.mubr.msk.f32.mxu0 %vm11550_vm7, %v11548_v17  ;;  %11065 = vmatprep.subr.bf16.mxu0 %v11549_v55 }
 0x715   :  { %10425 = vmatmul.mubr.f32.vlgmr.msra.gmra.mrb[10].mxu1 %v4908_v51  ;;  %10467 = vmatmul.mubr.f32.vlgmr.msra.gmra.mrb[8].mxu0 %v5370_v56 }
 0x716   :  { %11049 = vmatpush3.bf16.xpose.msra.mxu1 %v11048_v47  ;;  %11067 = vmatpush3.bf16.xpose.msra.mxu0 %v11048_v47 }
 0x717   :  { %10431 = vmatprep.mubr.msk.f32.mxu1 %vm11550_vm7, %v11548_v17  ;;  %11050 = vmatprep.subr.bf16.mxu1 %v11549_v55 }
 0x718   :  { %10473 = vmatprep.mubr.msk.f32.mxu0 %vm11550_vm7, %v11548_v17  ;;  %11068 = vmatprep.subr.bf16.mxu0 %v11549_v55 }
 0x71d   :  { %10432 = vmatmul.mubr.f32.vlgmr.msra.gmra.mrb[10].mxu1 %v12019_v31  ;;  %10474 = vmatmul.mubr.f32.vlgmr.msra.gmra.mrb[8].mxu0 %v12021_v38 }
 0x71e   :  { %11052 = vmatpush3.bf16.xpose.msra.mxu1 %v11036_v60  ;;  %11070 = vmatpush3.bf16.xpose.msra.mxu0 %v11036_v60 }
 0x71f   :  { %11072 = vmatprep.subr.bf16.mxu1 %v12042_v34  ;;  %10438 = vmatprep.mubr.msk.f32.mxu1 %vm11550_vm7, %v11548_v17 }
 0x720   :  { %10480 = vmatprep.mubr.msk.f32.mxu0 %vm11550_vm7, %v11548_v17 }
 0x725   :  { %10439 = vmatmul.mubr.f32.vlgmr.msra.gmra.mrb[10].mxu1 %v12019_v31  ;;  %10481 = vmatmul.mubr.f32.vlgmr.msra.gmra.mrb[8].mxu0 %v12021_v38 }
 0x726   :  { %11074 = vmatpush3.bf16.msra.mxu1 %v12042_v34 }
 0x727   :  { %11076 = vmatprep.subr.bf16.mxu1 %v12053_v12 }
 0x7f8   :  { %v5294_v16 = vpop.f32.mrb[10].mxu1  ;;  %v5756_v23 = vpop.f32.mrb[8].mxu0 }
 0x7f9   :  { %v10440_v25 = vpop.f32.mrb[11].mxu1  ;;  %v5763_v28 = vrot.slane %v5294_v16, %v11787_v45  ;;  %v10482_v0 = vpop.f32.mrb[9].mxu0  ;;  %v5774_v48 = vrot.slane %v5294_v16, %v2010_v44  ;;  %v5785_v30 = vrot.slane %v5294_v16, %v2021_v52  ;;  %v5811_v32 = vrot.slane %v5756_v23, %v11796_v58 }
 0x7fa   :  { %v5796_v53 = vrot.slane %v5294_v16, %v2032_v19 }
 0x7fb   :  { %5769 = vbcast.lane.b32.xlu1 %v5763_v28, 264  ;;  %5765 = vbcast.lane.b32.xlu0 %v5763_v28, 256  ;;  %v5819_v33 = vrot.slane %v5811_v32, %v11796_v58  ;;  %v5812_v63 = vcombine.high %v5811_v32, %v5811_v32 }
 0x7fd   :  { %v5832_v35 = vrot.slane %v5819_v33, %v11787_v45  ;;  %v5826_v56 = vrot.slane %v5812_v63, %v11796_v58  ;;  %v5827_v59 = vcombine.high %v5819_v33, %v5819_v33 }
 0x7ff   :  { %5780 = vbcast.lane.b32.xlu1 %v5774_v48, 264  ;;  %5776 = vbcast.lane.b32.xlu0 %v5774_v48, 256  ;;  %v5836_v57 = vrot.slane %v5826_v56, %v11787_v45  ;;  %v5840_v62 = vrot.slane %v5827_v59, %v11787_v45  ;;  %v5828_v16 = vcombine.high %v5826_v56, %v5826_v56 }
 0x803   :  { %5791 = vbcast.lane.b32.xlu1 %v5785_v30, 264  ;;  %5787 = vbcast.lane.b32.xlu0 %v5785_v30, 256  ;;  %v5844_v30 = vrot.slane %v5828_v16, %v11787_v45 }
 0x86d   :  { %v5770_v29 = vpop.permute.xlu1 %5769  ;;  %v5766_v37 = vpop.permute.xlu0 %5765 }
 0x86e   :  { %v5850_v31 = vadd.f32 %v5832_v35, %v5770_v29  ;;  %v5849_v38 = vadd.f32 %v5832_v35, %v5766_v37 }
 0x870   :  { %v5858_v39 = vmul.f32 0.2, %v5850_v31  ;;  %v5857_v41 = vmul.f32 0.2, %v5849_v38 }
 0x871   :  { %v5777_v50 = vpop.permute.xlu0 %5776  ;;  %v5781_v54 = vpop.permute.xlu1 %5780 }
 0x872   :  { %v5866_v44 = vmax.f32 %v5850_v31, %v5858_v39  ;;  %v5865_v43 = vmax.f32 %v5849_v38, %v5857_v41  ;;  %v5852_v60 = vadd.f32 %v5836_v57, %v5781_v54  ;;  %v5851_v61 = vadd.f32 %v5836_v57, %v5777_v50 }
 0x874   :  { %v5874_v46 = vadd.f32 %v5866_v44, %v11807_v13  ;;  %v5873_v52 = vadd.f32 %v5865_v43, %v11804_v9  ;;  %v5860_v1 = vmul.f32 0.2, %v5852_v60  ;;  %v5859_v2 = vmul.f32 0.2, %v5851_v61 }
 0x875   :  { %v5788_v36 = vpop.permute.xlu0 %5787  ;;  %v5792_v7 = vpop.permute.xlu1 %5791 }
 0x876   :  { %v5884_v51 = vsel %vm2118_vm14, %v5874_v46, -inf  ;;  %v5881_v14 = vsel %vm2118_vm14, %v5873_v52, -inf  ;;  %v5853_v5 = vadd.f32 %v5840_v62, %v5788_v36  ;;  %v5868_v19 = vmax.f32 %v5852_v60, %v5860_v1 }
 0x877   :  { %5885 = vmax.xlane.f32.xlu1 %v5884_v51  ;;  %5882 = vmax.xlane.f32.xlu0 %v5881_v14  ;;  %v5867_v3 = vmax.f32 %v5851_v61, %v5859_v2  ;;  %v5854_v20 = vadd.f32 %v5840_v62, %v5792_v7 }
 0x878   :  { %v5861_v11 = vmul.f32 0.2, %v5853_v5  ;;  %v5876_v22 = vadd.f32 %v5868_v19, %v11807_v13 }
 0x879   :  { %v5862_v8 = vmul.f32 0.2, %v5854_v20  ;;  %v5875_v47 = vadd.f32 %v5867_v3, %v11804_v9 }
 0x87a   :  { %v5869_v58 = vmax.f32 %v5853_v5, %v5861_v11  ;;  %v5890_v26 = vsel %vm2118_vm14, %v5876_v22, -inf }
 0x87b   :  { %v5870_v15 = vmax.f32 %v5854_v20, %v5862_v8  ;;  %v5887_v27 = vsel %vm2118_vm14, %v5875_v47, -inf }
 0x87c   :  { %v5877_v4 = vadd.f32 %v5869_v58, %v11804_v9 }
 0x87d   :  { %v5878_v40 = vadd.f32 %v5870_v15, %v11807_v13 }
 0x87e   :  { %v5893_v18 = vsel %vm2118_vm14, %v5877_v4, -inf }
 0x87f   :  { %v5896_v24 = vsel %vm2118_vm14, %v5878_v40, -inf }
 0x888   :  { %5802 = vbcast.lane.b32.xlu1 %v5796_v53, 264 }
 0x88d   :  { %5798 = vbcast.lane.b32.xlu0 %v5796_v53, 256 }
 0x8ac   :  { %5891 = vmax.xlane.f32.xlu1 %v5890_v26  ;;  %5888 = vmax.xlane.f32.xlu0 %v5887_v27 }
 0x8b0   :  { %5894 = vmax.xlane.f32.xlu0 %v5893_v18 }
 0x8b4   :  { %5897 = vmax.xlane.f32.xlu0 %v5896_v24 }
 0x904   :  { %v5886_v23 = vpop.xlane.xlu1 %5885  ;;  %v5883_v25 = vpop.xlane.xlu0 %5882 }
 0x905   :  { %v5906_v28 = vsub.f32 %v5874_v46, %v5886_v23  ;;  %v5905_v0 = vsub.f32 %v5873_v52, %v5883_v25 }
 0x907   :  { %v5913_v48 = vmul.f32 1.442695, %v5905_v0  ;;  %v5915_v32 = vmul.f32 1.442695, %v5906_v28 }
 0x908   :  { %v5803_v33 = vpop.permute.xlu1 %5802  ;;  %v5799_v35 = vpop.permute.xlu0 %5798 }
 0x909   :  { %v5856_v29 = vadd.f32 %v5844_v30, %v5803_v33  ;;  %v5855_v37 = vadd.f32 %v5844_v30, %v5799_v35  ;;  %11484 = vpow2.f32 %v5913_v48 }
 0x90a   :  { %11486 = vpow2.f32 %v5915_v32 }
 0x90b   :  { %v5864_v31 = vmul.f32 0.2, %v5856_v29  ;;  %v5863_v38 = vmul.f32 0.2, %v5855_v37 }
 0x90d   :  { %v5872_v39 = vmax.f32 %v5856_v29, %v5864_v31  ;;  %v5871_v41 = vmax.f32 %v5855_v37, %v5863_v38 }
 0x90f   :  { %v5879_v44 = vadd.f32 %v5871_v41, %v11804_v9  ;;  %v5880_v46 = vadd.f32 %v5872_v39, %v11807_v13 }
 0x911   :  { %v5899_v43 = vsel %vm2118_vm14, %v5879_v44, -inf  ;;  %v5902_v51 = vsel %vm2118_vm14, %v5880_v46, -inf }
 0x912   :  { %5900 = vmax.xlane.f32.xlu1 %v5899_v43 }
 0x913   :  { %v11485_v52 = vpop.eup %11484 }
 0x914   :  { %v5929_v45 = vsel %vm2118_vm14, %v11485_v52, 0.0  ;;  %v11487_v14 = vpop.eup %11486 }
 0x915   :  { %5930 = vadd.xlane.f32.xlu0 %v5929_v45  ;;  %v5932_v53 = vsel %vm2118_vm14, %v11487_v14, 0.0 }
 0x916   :  { %5903 = vmax.xlane.f32.xlu1 %v5902_v51 }
 0x919   :  { %5933 = vadd.xlane.f32.xlu0 %v5932_v53 }
 0x927   :  { %6477 = vrot.lane.b32.xlu1 %v12034_v49, %s11553_s25 }
 0x939   :  { %v5892_v9 = vpop.xlane.xlu1 %5891  ;;  %v5889_v63 = vpop.xlane.xlu0 %5888 }
 0x93a   :  { %v5908_v56 = vsub.f32 %v5876_v22, %v5892_v9  ;;  %v5907_v50 = vsub.f32 %v5875_v47, %v5889_v63 }
 0x93c   :  { %v5919_v13 = vmul.f32 1.442695, %v5908_v56  ;;  %v5917_v54 = vmul.f32 1.442695, %v5907_v50 }
 0x93d   :  { %v5895_v36 = vpop.xlane.xlu0 %5894 }
 0x93e   :  { %11488 = vpow2.f32 %v5919_v13  ;;  %v5909_v2 = vsub.f32 %v5877_v4, %v5895_v36 }
 0x93f   :  { %11490 = vpow2.f32 %v5917_v54 }
 0x940   :  { %v5921_v7 = vmul.f32 1.442695, %v5909_v2 }
 0x941   :  { %v5898_v62 = vpop.xlane.xlu0 %5897 }
 0x942   :  { %v5910_v1 = vsub.f32 %v5878_v40, %v5898_v62 }
 0x944   :  { %v5923_v5 = vmul.f32 1.442695, %v5910_v1 }
 0x946   :  { %11492 = vpow2.f32 %v5923_v5 }
 0x947   :  { %11494 = vpow2.f32 %v5921_v7 }
 0x948   :  { %v12128_v57 = vpop.eup %11488 }
 0x949   :  { %v12130_v59 = vpop.eup %11490  ;;  %v5938_v60 = vsel %vm2118_vm14, %v12128_v57, 0.0 }
 0x94a   :  { %5939 = vadd.xlane.f32.xlu0 %v5938_v60  ;;  %v5935_v61 = vsel %vm2118_vm14, %v12130_v59, 0.0 }
 0x94b   :  { %5936 = vadd.xlane.f32.xlu1 %v5935_v61 }
 0x950   :  { %v12140_v19 = vpop.eup %11492 }
 0x951   :  { %v12142_v3 = vpop.eup %11494  ;;  %v5944_v20 = vsel %vm2118_vm14, %v12140_v19, 0.0 }
 0x952   :  { %v5941_v11 = vsel %vm2118_vm14, %v12142_v3, 0.0 }
 0x95c   :  { %6991 = vrot.lane.b32.xlu1 %v12034_v49, %s11554_s26 }
 0x960   :  { %6479 = vrot.lane.b32.xlu0 %v12029_v42, %s11553_s25 }
 0x97f   :  { %5945 = vadd.xlane.f32.xlu0 %v5944_v20 }
 0x980   :  { %5942 = vadd.xlane.f32.xlu1 %v5941_v11 }
 0x99f   :  { %v5901_v8 = vpop.xlane.xlu1 %5900 }
 0x9a0   :  { %v5911_v58 = vsub.f32 %v5879_v44, %v5901_v8 }
 0x9a2   :  { %v5925_v22 = vmul.f32 1.442695, %v5911_v58  ;;  %v5931_v47 = vpop.xlane.xlu0 %5930 }
 0x9a3   :  { %v5904_v15 = vpop.xlane.xlu1 %5903 }
 0x9a4   :  { %11496 = vpow2.f32 %v5925_v22  ;;  %v5912_v26 = vsub.f32 %v5880_v46, %v5904_v15 }
 0x9a5   :  { %11498 = vrcp.f32 %v5931_v47 }
 0x9a6   :  { %v5927_v27 = vmul.f32 1.442695, %v5912_v26  ;;  %v5934_v4 = vpop.xlane.xlu0 %5933 }
 0x9a7   :  { %v6478_v43 = vpop.permute.xlu1 %6477 }
 0x9a8   :  { %11500 = vpow2.f32 %v5927_v27 }
 0x9a9   :  { %11502 = vrcp.f32 %v5934_v4 }
 0x9ae   :  { %v12148_v18 = vpop.eup %11496 }
 0x9af   :  { %v11499_v40 = vpop.eup %11498  ;;  %v5947_v24 = vsel %vm2118_vm14, %v12148_v18, 0.0 }
 0x9b0   :  { %v5954_v16 = vmul.f32 %v11499_v40, %v11485_v52  ;;  %5948 = vadd.xlane.f32.xlu1 %v5947_v24 }
 0x9b2   :  { %v12152_v23 = vpop.eup %11500  ;;  %v5970_v25 = vsel %vm2118_vm14, %v5954_v16, 0 }
 0x9b3   :  { %v11503_v28 = vpop.eup %11502  ;;  %v5950_v0 = vsel %vm2118_vm14, %v12152_v23, 0.0  ;;  %v6042_v48 = vand.u32 4294901760, %v5970_v25 }
 0x9b4   :  { %v5956_v30 = vmul.f32 %v11503_v28, %v11487_v14  ;;  %5951 = vadd.xlane.f32.xlu0 %v5950_v0 }
 0x9b5   :  { %v6043_v32 = vsub.f32 %v5970_v25, %v6042_v48 }
 0x9b6   :  { %v5973_v33 = vsel %vm2118_vm14, %v5956_v30, 0 }
 0x9b7   :  { %v6044_v35 = vand.u32 4294901760, %v6043_v32  ;;  %v6052_v29 = vand.u32 4294901760, %v5973_v33 }
 0x9b9   :  { %v6045_v37 = vsub.f32 %v6043_v32, %v6044_v35  ;;  %v6053_v31 = vsub.f32 %v5973_v33, %v6052_v29 }
 0x9bb   :  { %v6046_v38 = vand.u32 4294901760, %v6045_v37  ;;  %v6054_v39 = vand.u32 4294901760, %v6053_v31 }
 0x9bd   :  { %10487 = vmatprep.mubr.f32.mxu1 %v6046_v38  ;;  %v6055_v41 = vsub.f32 %v6053_v31, %v6054_v39 }
 0x9bf   :  { %v6056_v44 = vand.u32 4294901760, %v6055_v41 }
 0x9c1   :  { %10488 = vmatmul.mubr.f32.vlgmr.msra.gmra.mrb[12].mxu1 %v6056_v44  ;;  %7505 = vrot.lane.b32.xlu1 %v12034_v49, %s11555_s27  ;;  %v6490_v49 = vand.u32 4294901760, %v6478_v43 }
 0x9c2   :  { %11078 = vmatpush3.bf16.msra.mxu1 %v12053_v12  ;;  %10494 = vmatprep.mubr.f32.mxu1 %v6042_v48 }
 0x9c3   :  { %11080 = vmatprep.subr.bf16.mxu1 %v12047_v6  ;;  %v6578_v52 = vsub.f32 %v6478_v43, %v6490_v49 }
 0x9c5   :  { %7507 = vrot.lane.b32.xlu1 %v12029_v42, %s11555_s27  ;;  %v6579_v45 = vand.u32 4294901760, %v6578_v52 }
 0x9c7   :  { %v6580_v9 = vsub.f32 %v6578_v52, %v6579_v45 }
 0x9c9   :  { %10495 = vmatmul.mubr.f32.vlgmr.msra.gmra.mrb[12].mxu1 %v6052_v29  ;;  %v6581_v60 = vand.u32 4294901760, %v6580_v9 }
 0x9ca   :  { %11082 = vmatpush3.bf16.msra.mxu1 %v12047_v6  ;;  %10501 = vmatprep.mubr.f32.mxu1 %v6043_v32 }
 0x9cb   :  { %11084 = vmatprep.subr.bf16.mxu1 %v12042_v34  ;;  %6993 = vrot.lane.b32.xlu0 %v12029_v42, %s11554_s26 }
 0x9d1   :  { %10502 = vmatmul.mubr.f32.vlgmr.msra.gmra.mrb[12].mxu1 %v6053_v31 }
 0x9d2   :  { %11086 = vmatpush3.bf16.msra.mxu1 %v12042_v34  ;;  %10508 = vmatprep.mubr.f32.mxu1 %v6044_v35 }
 0x9d3   :  { %11088 = vmatprep.subr.bf16.mxu1 %v12051_v21 }
 0x9d7   :  { %v5940_v12 = vpop.xlane.xlu0 %5939 }
 0x9d8   :  { %11504 = vrcp.f32 %v5940_v12  ;;  %v5937_v46 = vpop.xlane.xlu1 %5936 }
 0x9d9   :  { %10509 = vmatmul.mubr.f32.vlgmr.msra.gmra.mrb[12].mxu1 %v6054_v39  ;;  %11506 = vrcp.f32 %v5937_v46 }
 0x9da   :  { %11090 = vmatpush3.bf16.msra.mxu1 %v12051_v21  ;;  %10515 = vmatprep.mubr.f32.mxu1 %v6042_v48 }
 0x9db   :  { %11092 = vmatprep.subr.bf16.mxu1 %v12042_v34  ;;  %v6480_v42 = vpop.permute.xlu0 %6479 }
 0x9dc   :  { %v6493_v6 = vand.u32 4294901760, %v6480_v42  ;;  %v6992_v47 = vpop.permute.xlu1 %6991 }
 0x9dd   :  { %v7004_v35 = vand.u32 4294901760, %v6992_v47 }
 0x9de   :  { %v6585_v51 = vsub.f32 %v6480_v42, %v6493_v6  ;;  %v11095_v14 = vpack.c.bf16 %v6493_v6, %v6490_v49 }
 0x9df   :  { %v12195_v39 = vsub.f32 %v6992_v47, %v7004_v35 }
 0x9e0   :  { %v6586_v53 = vand.u32 4294901760, %v6585_v51  ;;  %v11103_v58 = vpack.c.bf16 %v6585_v51, %v6578_v52 }
 0x9e1   :  { %10516 = vmatmul.mubr.f32.vlgmr.msra.gmra.mrb[12].mxu1 %v6052_v29  ;;  %v7093_v52 = vand.u32 4294901760, %v12195_v39 }
 0x9e2   :  { %v11505_v63 = vpop.eup %11504  ;;  %v6587_v56 = vsub.f32 %v6585_v51, %v6586_v53  ;;  %11094 = vmatpush3.bf16.msra.mxu1 %v12042_v34  ;;  %10522 = vmatprep.mubr.f32.mxu1 %v6042_v48  ;;  %v11111_v22 = vpack.c.bf16 %v6586_v53, %v6579_v45 }
 0x9e3   :  { %v11507_v50 = vpop.eup %11506  ;;  %v5960_v13 = vmul.f32 %v11505_v63, %v12128_v57  ;;  %11096 = vmatprep.subr.bf16.mxu1 %v11095_v14 }
 0x9e4   :  { %v5958_v21 = vmul.f32 %v11507_v50, %v12130_v59  ;;  %v6588_v54 = vand.u32 4294901760, %v6587_v56  ;;  %v7094_v50 = vsub.f32 %v12195_v39, %v7093_v52 }
 0x9e5   :  { %v6487_v61 = vsel %vm2118_vm14, %v5960_v13, 0 }
 0x9e6   :  { %v6484_v36 = vsel %vm2118_vm14, %v5958_v21, 0  ;;  %v6566_v62 = vand.u32 4294901760, %v6487_v61  ;;  %v11099_v1 = vpack.c.bf16 %v6588_v54, %v6581_v60 }
 0x9e7   :  { %v6556_v2 = vand.u32 4294901760, %v6484_v36 }
 0x9e8   :  { %v6567_v5 = vsub.f32 %v6487_v61, %v6566_v62 }
 0x9e9   :  { %10523 = vmatmul.mubr.f32.vlgmr.msra.gmra.mrb[12].mxu1 %v6052_v29  ;;  %v6557_v7 = vsub.f32 %v6484_v36, %v6556_v2 }
 0x9ea   :  { %11098 = vmatpush3.bf16.msra.mxu1 %v11095_v14  ;;  %v6568_v34 = vand.u32 4294901760, %v6567_v5 }
 0x9eb   :  { %11100 = vmatprep.subr.bf16.mxu1 %v11099_v1  ;;  %v6558_v20 = vand.u32 4294901760, %v6557_v7 }
 0x9ec   :  { %v6569_v57 = vsub.f32 %v6567_v5, %v6568_v34 }
 0x9ed   :  { %v6559_v11 = vsub.f32 %v6557_v7, %v6558_v20 }
 0x9ee   :  { %v6570_v59 = vand.u32 4294901760, %v6569_v57 }
 0x9ef   :  { %v6560_v8 = vand.u32 4294901760, %v6559_v11 }
 0x9f1   :  { %10529 = vmatprep.mubr.f32.mxu1 %v6560_v8 }
 0x9f2   :  { %10530 = vmatmul.mubr.f32.vlgmr.msra.gmra.mrb[14].mxu1 %v6570_v59 }
 0x9f3   :  { %11102 = vmatpush3.bf16.msra.mxu1 %v11099_v1  ;;  %10536 = vmatprep.mubr.f32.mxu1 %v6556_v2 }
 0x9f4   :  { %11104 = vmatprep.subr.bf16.mxu1 %v11103_v58 }
 0x9fa   :  { %10537 = vmatmul.mubr.f32.vlgmr.msra.gmra.mrb[14].mxu1 %v6566_v62 }
 0x9fb   :  { %11106 = vmatpush3.bf16.msra.mxu1 %v11103_v58  ;;  %10543 = vmatprep.mubr.f32.mxu1 %v6557_v7  ;;  %v7095_v7 = vand.u32 4294901760, %v7094_v50 }
 0x9fc   :  { %11108 = vmatprep.subr.bf16.mxu1 %v11095_v14 }
 0xa02   :  { %10544 = vmatmul.mubr.f32.vlgmr.msra.gmra.mrb[14].mxu1 %v6567_v5 }
 0xa03   :  { %11110 = vmatpush3.bf16.msra.mxu1 %v11095_v14  ;;  %10550 = vmatprep.mubr.f32.mxu1 %v6558_v20 }
 0xa04   :  { %11112 = vmatprep.subr.bf16.mxu1 %v11111_v22 }
 0xa0a   :  { %10551 = vmatmul.mubr.f32.vlgmr.msra.gmra.mrb[14].mxu1 %v6568_v34 }
 0xa0b   :  { %11114 = vmatpush3.bf16.msra.mxu1 %v11111_v22  ;;  %10557 = vmatprep.mubr.f32.mxu1 %v6556_v2 }
 0xa0c   :  { %11116 = vmatprep.subr.bf16.mxu1 %v11095_v14  ;;  %v5946_v0 = vpop.xlane.xlu0 %5945 }
 0xa0d   :  { %v5943_v15 = vpop.xlane.xlu1 %5942 }
 0xa0e   :  { %11508 = vrcp.f32 %v5943_v15 }
 0xa0f   :  { %11510 = vrcp.f32 %v5946_v0 }
 0xa12   :  { %10558 = vmatmul.mubr.f32.vlgmr.msra.gmra.mrb[14].mxu1 %v6566_v62 }
 0xa13   :  { %11118 = vmatpush3.bf16.msra.mxu1 %v11095_v14  ;;  %10564 = vmatprep.mubr.f32.mxu1 %v6556_v2 }
 0xa18   :  { %v11509_v26 = vpop.eup %11508 }
 0xa19   :  { %v5962_v27 = vmul.f32 %v11509_v26, %v12142_v3  ;;  %v11511_v48 = vpop.eup %11510 }
 0xa1a   :  { %10565 = vmatmul.mubr.f32.vlgmr.msra.gmra.mrb[14].mxu1 %v6566_v62  ;;  %v5964_v3 = vmul.f32 %v11511_v48, %v12140_v19 }
 0xa1b   :  { %v6998_v4 = vsel %vm2118_vm14, %v5962_v27, 0 }
 0xa1c   :  { %v12179_v40 = vand.u32 4294901760, %v6998_v4  ;;  %v7001_v30 = vsel %vm2118_vm14, %v5964_v3, 0 }
 0xa1d   :  { %v12190_v32 = vand.u32 4294901760, %v7001_v30 }
 0xa1e   :  { %v12182_v24 = vsub.f32 %v6998_v4, %v12179_v40 }
 0xa1f   :  { %v12193_v29 = vsub.f32 %v7001_v30, %v12190_v32 }
 0xa20   :  { %v7072_v16 = vand.u32 4294901760, %v12182_v24 }
 0xa21   :  { %v7082_v19 = vand.u32 4294901760, %v12193_v29 }
 0xa22   :  { %v7073_v25 = vsub.f32 %v12182_v24, %v7072_v16 }
 0xa23   :  { %v7083_v14 = vsub.f32 %v12193_v29, %v7082_v19 }
 0xa24   :  { %v7074_v28 = vand.u32 4294901760, %v7073_v25 }
 0xa25   :  { %v7084_v60 = vand.u32 4294901760, %v7083_v14 }
 0xa26   :  { %10571 = vmatprep.mubr.f32.mxu0 %v7074_v28 }
 0xa3d   :  { %v5949_v33 = vpop.xlane.xlu1 %5948 }
 0xa3e   :  { %11512 = vrcp.f32 %v5949_v33  ;;  %v9582_v33 = vld [vmem:[%s12400_s1 + $0x2] ss:$0 sm:$0xff] }
 0xa3f   :  { %vm8055_vm2 = vcmp.eq.s32.totalorder %v11602_v10, %v9582_v33 }
 0xa41   :  { %v7506_v37 = vpop.permute.xlu1 %7505  ;;  %v5952_v31 = vpop.xlane.xlu0 %5951 }
 0xa42   :  { %v7518_v38 = vand.u32 4294901760, %v7506_v37  ;;  %11514 = vrcp.f32 %v5952_v31 }
 0xa44   :  { %v12197_v41 = vsub.f32 %v7506_v37, %v7518_v38 }
 0xa45   :  { %v7508_v44 = vpop.permute.xlu1 %7507  ;;  %v6994_v43 = vpop.permute.xlu0 %6993 }
 0xa46   :  { %v7607_v49 = vand.u32 4294901760, %v12197_v41  ;;  %v7521_v12 = vand.u32 4294901760, %v7508_v44  ;;  %v7007_v46 = vand.u32 4294901760, %v6994_v43 }
 0xa48   :  { %v11513_v42 = vpop.eup %11512  ;;  %v12202_v6 = vpack.c.bf16 %v7521_v12, %v7518_v38  ;;  %v12204_v45 = vsub.f32 %v7508_v44, %v7521_v12  ;;  %v12206_v51 = vpack.c.bf16 %v7007_v46, %v7004_v35  ;;  %v7099_v9 = vsub.f32 %v6994_v43, %v7007_v46 }
 0xa49   :  { %v5966_v53 = vmul.f32 %v11513_v42, %v12148_v18  ;;  %v7608_v63 = vsub.f32 %v12197_v41, %v7607_v49  ;;  %v9583_v35 = vsel %vm8055_vm2, 1.0, %v11548_v17 }
 0xa4a   :  { %v7614_v56 = vand.u32 4294901760, %v12204_v45  ;;  %11120 = vmatprep.subr.bf16.mxu0 %v12206_v51  ;;  %11144 = vmatprep.subr.bf16.mxu1 %v12202_v6  ;;  %v7100_v13 = vand.u32 4294901760, %v7099_v9  ;;  %v11151_v4 = vpack.c.bf16 %v12204_v45, %v12197_v41  ;;  %v8064_v38 = vsel %vm2118_vm14, %v9583_v35, 0 }
 0xa4b   :  { %11122 = vmatpush3.bf16.msra.mxu0 %v12206_v51  ;;  %11146 = vmatpush3.bf16.msra.mxu1 %v12202_v6  ;;  %v7512_v18 = vsel %vm2118_vm14, %v5966_v53, 0  ;;  %v7609_v1 = vand.u32 4294901760, %v7608_v63 }
 0xa4c   :  { %v11515_v21 = vpop.eup %11514  ;;  %v7615_v54 = vsub.f32 %v12204_v45, %v7614_v56  ;;  %v12223_v61 = vand.u32 4294901760, %v7512_v18  ;;  %v7101_v62 = vsub.f32 %v7099_v9, %v7100_v13  ;;  %v11135_v25 = vpack.c.bf16 %v7100_v13, %v7093_v52 }
 0xa4d   :  { %v5968_v36 = vmul.f32 %v11515_v21, %v12152_v23  ;;  %v11127_v23 = vpack.c.bf16 %v7099_v9, %v12195_v39  ;;  %v11159_v28 = vpack.c.bf16 %v7614_v56, %v7607_v49 }
 0xa4e   :  { %10572 = vmatmul.mubr.f32.vlgmr.msra.gmra.mrb[10].mxu0 %v7084_v60  ;;  %v7616_v2 = vand.u32 4294901760, %v7615_v54  ;;  %v7585_v5 = vsub.f32 %v7512_v18, %v12223_v61  ;;  %v7102_v34 = vand.u32 4294901760, %v7101_v62 }
 0xa4f   :  { %10578 = vmatprep.mubr.f32.mxu0 %v12179_v40  ;;  %v7515_v20 = vsel %vm2118_vm14, %v5968_v36, 0 }
 0xa50   :  { %v11147_v57 = vpack.c.bf16 %v7616_v2, %v7609_v1  ;;  %v7586_v11 = vand.u32 4294901760, %v7585_v5  ;;  %v7594_v8 = vand.u32 4294901760, %v7515_v20  ;;  %v11123_v59 = vpack.c.bf16 %v7102_v34, %v7095_v7  ;;  %v8528_v7 = vld [vmem:[%s12401_s2 + $0x50] sm:$0xff] }
 0xa52   :  { %11148 = vmatprep.subr.bf16.mxu1 %v11147_v57  ;;  %v7587_v58 = vsub.f32 %v7585_v5, %v7586_v11  ;;  %v7595_v22 = vsub.f32 %v7515_v20, %v7594_v8  ;;  %11124 = vmatprep.subr.bf16.mxu0 %v11123_v59  ;;  %v8543_v20 = vand.u32 4294901760, %v8528_v7 }
 0xa53   :  { %11126 = vmatpush3.bf16.msra.mxu0 %v11123_v59  ;;  %v8529_v59 = vld [vmem:[%s12401_s2 + $0x58] sm:$0xff] }
 0xa54   :  { %v7588_v47 = vand.u32 4294901760, %v7587_v58  ;;  %v7596_v15 = vand.u32 4294901760, %v7595_v22  ;;  %11128 = vmatprep.subr.bf16.mxu0 %v11127_v23  ;;  %v8530_v58 = vld [vmem:[%s12401_s2 + $0x60] sm:$0xff] }
 0xa56   :  { %10613 = vmatprep.mubr.f32.mxu1 %v7588_v47  ;;  %v7597_v26 = vsub.f32 %v7595_v22, %v7596_v15  ;;  %10579 = vmatmul.mubr.f32.vlgmr.msra.gmra.mrb[10].mxu0 %v12190_v32 }
 0xa57   :  { %11130 = vmatpush3.bf16.msra.mxu0 %v11127_v23  ;;  %10585 = vmatprep.mubr.f32.mxu0 %v12182_v24  ;;  %v8549_v23 = vand.u32 4294901760, %v8530_v58 }
 0xa58   :  { %v7598_v27 = vand.u32 4294901760, %v7597_v26  ;;  %11132 = vmatprep.subr.bf16.mxu0 %v12206_v51 }
 0xa5a   :  { %10614 = vmatmul.mubr.f32.vlgmr.msra.gmra.mrb[16].mxu1 %v7598_v27 }
 0xa5b   :  { %11150 = vmatpush3.bf16.msra.mxu1 %v11147_v57  ;;  %10620 = vmatprep.mubr.f32.mxu1 %v12223_v61 }
 0xa5c   :  { %11152 = vmatprep.subr.bf16.mxu1 %v11151_v4 }
 0xa5e   :  { %10586 = vmatmul.mubr.f32.vlgmr.msra.gmra.mrb[10].mxu0 %v12193_v29  ;;  %v8059_v29 = vsel %vm8058_vm3, %v9583_v35, 0.0 }
 0xa5f   :  { %11134 = vmatpush3.bf16.msra.mxu0 %v12206_v51  ;;  %10592 = vmatprep.mubr.f32.mxu0 %v7072_v16 }
 0xa60   :  { %11136 = vmatprep.subr.bf16.mxu0 %v11135_v25 }
 0xa62   :  { %10621 = vmatmul.mubr.f32.vlgmr.msra.gmra.mrb[16].mxu1 %v7594_v8 }
 0xa63   :  { %11154 = vmatpush3.bf16.msra.mxu1 %v11151_v4  ;;  %10627 = vmatprep.mubr.f32.mxu1 %v7585_v5  ;;  %v8527_v5 = vld [vmem:[%s12401_s2 + $0x48] sm:$0xff]  ;;  %v8641_v4 = vsub.f32 %v8530_v58, %v8549_v23 }
 0xa64   :  { %11156 = vmatprep.subr.bf16.mxu1 %v12202_v6  ;;  %v8540_v34 = vand.u32 4294901760, %v8527_v5 }
 0xa66   :  { %10593 = vmatmul.mubr.f32.vlgmr.msra.gmra.mrb[10].mxu0 %v7082_v19  ;;  %v8134_v19 = vsub.f32 %v8064_v38, %v8064_v38  ;;  %v12307_v57 = vpack.c.bf16 %v8543_v20, %v8540_v34 }
 0xa67   :  { %11138 = vmatpush3.bf16.msra.mxu0 %v11135_v25  ;;  %10599 = vmatprep.mubr.f32.mxu0 %v12179_v40 }
 0xa68   :  { %11140 = vmatprep.subr.bf16.mxu0 %v12206_v51  ;;  %v8135_v10 = vand.u32 4294901760, %v8134_v19 }
 0xa6a   :  { %10628 = vmatmul.mubr.f32.vlgmr.msra.gmra.mrb[16].mxu1 %v7595_v22  ;;  %v8136_v53 = vsub.f32 %v8134_v19, %v8135_v10  ;;  %v8546_v22 = vand.u32 4294901760, %v8529_v59 }
 0xa6b   :  { %11158 = vmatpush3.bf16.msra.mxu1 %v12202_v6  ;;  %10634 = vmatprep.mubr.f32.mxu1 %v7586_v11  ;;  %v8620_v11 = vsub.f32 %v8527_v5, %v8540_v34 }
 0xa6c   :  { %11160 = vmatprep.subr.bf16.mxu1 %v11159_v28  ;;  %v8137_v18 = vand.u32 4294901760, %v8136_v53  ;;  %v11189_v26 = vpack.c.bf16 %v8549_v23, %v8546_v22  ;;  %v8634_v27 = vsub.f32 %v8529_v59, %v8546_v22 }
 0xa6d   :  { %v8621_v47 = vand.u32 4294901760, %v8620_v11 }
 0xa6e   :  { %10600 = vmatmul.mubr.f32.vlgmr.msra.gmra.mrb[10].mxu0 %v12190_v32 }
 0xa6f   :  { %11142 = vmatpush3.bf16.msra.mxu0 %v12206_v51  ;;  %10606 = vmatprep.mubr.f32.mxu0 %v12179_v40  ;;  %v8622_v25 = vsub.f32 %v8620_v11, %v8621_v47 }
 0xa70   :  { %11167 = vmatprep.subr.bf16.mxu0 %v11549_v55 }
 0xa72   :  { %10635 = vmatmul.mubr.f32.vlgmr.msra.gmra.mrb[16].mxu1 %v7596_v15 }
 0xa73   :  { %11162 = vmatpush3.bf16.msra.mxu1 %v11159_v28  ;;  %10641 = vmatprep.mubr.f32.mxu1 %v12223_v61 }
 0xa74   :  { %11164 = vmatprep.subr.bf16.mxu1 %v12202_v6 }
 0xa76   :  { %10607 = vmatmul.mubr.f32.vlgmr.msra.gmra.mrb[10].mxu0 %v12190_v32 }
 0xa77   :  { %10655 = vmatprep.mubr.msk.f32.mxu0 %vm11550_vm7, %v11548_v17 }
 0xa7a   :  { %10642 = vmatmul.mubr.f32.vlgmr.msra.gmra.mrb[16].mxu1 %v7594_v8 }
 0xa7b   :  { %11166 = vmatpush3.bf16.msra.mxu1 %v12202_v6  ;;  %10648 = vmatprep.mubr.f32.mxu1 %v12223_v61 }
 0xa7c   :  { %11185 = vmatprep.subr.bf16.mxu1 %v11549_v55 }
 0xa82   :  { %10649 = vmatmul.mubr.f32.vlgmr.msra.gmra.mrb[16].mxu1 %v7594_v8  ;;  %v8627_v8 = vsub.f32 %v8528_v7, %v8543_v20 }
 0xa83   :  { %10701 = vmatprep.mubr.msk.f32.mxu1 %vm11550_vm7, %v11548_v17  ;;  %11187 = vmatpush3.bf16.msra.mxu1 %v12307_v57 }
 0xa84   :  { %v8628_v15 = vand.u32 4294901760, %v8627_v8  ;;  %11188 = vmatprep.subr.bf16.mxu1 %v11549_v55 }
 0xa86   :  { %v8629_v28 = vsub.f32 %v8627_v8, %v8628_v15 }
 0xa87   :  { %11190 = vmatpush3.bf16.msra.mxu1 %v11189_v26 }
 0xa88   :  { %11191 = vmatprep.subr.bf16.mxu1 %v11549_v55 }
 0xabc   :  { %v10524_v40 = vpop.f32.mrb[12].mxu1 }
 0xabd   :  { %v6467_v24 = vpop.f32.mrb[13].mxu1 }
 0xaed   :  { %v10566_v16 = vpop.f32.mrb[14].mxu1 }
 0xaee   :  { %v6981_v0 = vpop.f32.mrb[15].mxu1 }
 0xb49   :  { %v10608_v48 = vpop.f32.mrb[10].mxu0 }
 0xb4a   :  { %8031 = vrot.lane.b32.xlu1 %v10608_v48, %s11556_s28  ;;  %v7495_v3 = vpop.f32.mrb[11].mxu0 }
 0xb4b   :  { %8029 = vrot.lane.b32.xlu0 %v7495_v3, %s11556_s28 }
 0xb4e   :  { %8023 = vrot.lane.b32.xlu1 %v10566_v16, %s11557_s6  ;;  %v8635_v16 = vand.u32 4294901760, %v8634_v27 }
 0xb4f   :  { %8021 = vrot.lane.b32.xlu0 %v6981_v0, %s11557_s6  ;;  %v8642_v0 = vand.u32 4294901760, %v8641_v4 }
 0xb50   :  { %v8636_v3 = vsub.f32 %v8634_v27, %v8635_v16 }
 0xb51   :  { %v11213_v38 = vpack.c.bf16 %v8642_v0, %v8635_v16 }
 0xb55   :  { %v10650_v30 = vpop.f32.mrb[16].mxu1 }
 0xb56   :  { %8039 = vrot.lane.b32.xlu1 %v10650_v30, %s11558_s11  ;;  %v8009_v32 = vpop.f32.mrb[17].mxu1  ;;  %v8643_v30 = vsub.f32 %v8641_v4, %v8642_v0 }
 0xb57   :  { %8037 = vrot.lane.b32.xlu0 %v8009_v32, %s11558_s11  ;;  %v8637_v32 = vand.u32 4294901760, %v8636_v3 }
 0xb58   :  { %v8644_v33 = vand.u32 4294901760, %v8643_v30 }
 0xb76   :  { %8060 = vadd.xlane.f32.xlu0 %v8059_v29  ;;  %v11198_v29 = vpack.c.bf16 %v8627_v8, %v8620_v11 }
 0xbbc   :  { %v8032_v37 = vpop.permute.xlu1 %8031 }
 0xbbd   :  { %v8030_v31 = vpop.permute.xlu0 %8029 }
 0xbc0   :  { %v8024_v39 = vpop.permute.xlu1 %8023 }
 0xbc1   :  { %v8022_v41 = vpop.permute.xlu0 %8021  ;;  %v8044_v44 = vsel %vm571_vm0, %v10524_v40, %v8024_v39  ;;  %v8623_v40 = vand.u32 4294901760, %v8622_v25 }
 0xbc2   :  { %v8043_v43 = vsel %vm571_vm0, %v6467_v24, %v8022_v41  ;;  %v8046_v49 = vsel %vm2118_vm14, %v8044_v44, %v8032_v37  ;;  %v8630_v24 = vand.u32 4294901760, %v8629_v28  ;;  %v11201_v37 = vpack.c.bf16 %v8641_v4, %v8634_v27  ;;  %v9587_v27 = vld [vmem:[%s12401_s2 + $0x68] ss:$0 sm:$0xff] }
 0xbc3   :  { %v8045_v52 = vsel %vm2118_vm14, %v8043_v43, %v8030_v31  ;;  %v11210_v31 = vpack.c.bf16 %v8628_v15, %v8621_v47 }
 0xbc4   :  { %v11192_v48 = vpack.c.bf16 %v8630_v24, %v8623_v40 }
 0xbc8   :  { %v8040_v12 = vpop.permute.xlu1 %8039 }
 0xbc9   :  { %v8048_v46 = vsel %vm4285_vm15, %v8046_v49, %v8040_v12  ;;  %v8038_v42 = vpop.permute.xlu0 %8037 }
 0xbca   :  { %v8050_v6 = vmax.f32 %v8048_v46, 0.0  ;;  %v8047_v45 = vsel %vm4285_vm15, %v8045_v52, %v8038_v42 }
 0xbcb   :  { %v8049_v51 = vmax.f32 %v8047_v45, 0.0  ;;  %v9025_v45 = vld [vmem:[%s12401_s2 + $0x70] sm:$0xff] }
 0xbcc   :  { %v8070_v14 = vand.u32 4294901760, %v8050_v6 }
 0xbcd   :  { %v8067_v9 = vand.u32 4294901760, %v8049_v51 }
 0xbce   :  { %v8152_v63 = vsub.f32 %v8050_v6, %v8070_v14 }
 0xbcf   :  { %v11168_v56 = vpack.c.bf16 %v8070_v14, %v8067_v9  ;;  %v8145_v50 = vsub.f32 %v8049_v51, %v8067_v9  ;;  %v9026_v51 = vld [vmem:[%s12401_s2 + $0x78] sm:$0xff]  ;;  %v9038_v14 = vand.u32 4294901760, %v9025_v45 }
 0xbd0   :  { %v8153_v13 = vand.u32 4294901760, %v8152_v63  ;;  %v9041_v53 = vand.u32 4294901760, %v9026_v51 }
 0xbd1   :  { %v8146_v21 = vand.u32 4294901760, %v8145_v50  ;;  %11169 = vmatpush3.bf16.msra.mxu0 %v11168_v56  ;;  %v11174_v54 = vpack.c.bf16 %v8152_v63, %v8145_v50 }
 0xbd2   :  { %v8154_v60 = vsub.f32 %v8152_v63, %v8153_v13  ;;  %11170 = vmatprep.subr.bf16.mxu0 %v11549_v55  ;;  %v12346_v9 = vpack.c.bf16 %v9041_v53, %v9038_v14  ;;  %v9118_v63 = vsub.f32 %v9025_v45, %v9038_v14 }
 0xbd3   :  { %v8147_v61 = vsub.f32 %v8145_v50, %v8146_v21  ;;  %v11180_v36 = vpack.c.bf16 %v8153_v13, %v8146_v21  ;;  %v9027_v50 = vld [vmem:[%s12401_s2 + $0x80] sm:$0xff]  ;;  %v9028_v13 = vld [vmem:[%s12401_s2 + $0x88] sm:$0xff] }
 0xbd4   :  { %v8155_v62 = vand.u32 4294901760, %v8154_v60  ;;  %10656 = vmatmul.mubr.f32.vlgmr.msra.gmra.mrb[12].mxu0 %v8137_v18  ;;  %v9044_v18 = vand.u32 4294901760, %v9027_v50  ;;  %v9047_v21 = vand.u32 4294901760, %v9028_v13 }
 0xbd5   :  { %v8148_v1 = vand.u32 4294901760, %v8147_v61  ;;  %10662 = vmatprep.mubr.msk.f32.mxu0 %vm11550_vm7, %v11548_v17 }
 0xbd6   :  { %v11225_v61 = vpack.c.bf16 %v9047_v21, %v9044_v18 }
 0xbd7   :  { %v11171_v2 = vpack.c.bf16 %v8155_v62, %v8148_v1  ;;  %v9139_v62 = vsub.f32 %v9028_v13, %v9047_v21 }
 0xbd9   :  { %11172 = vmatpush3.bf16.msra.mxu0 %v11171_v2  ;;  %v9140_v20 = vand.u32 4294901760, %v9139_v62 }
 0xbda   :  { %11173 = vmatprep.subr.bf16.mxu0 %v11549_v55 }
 0xbdb   :  { %v9141_v8 = vsub.f32 %v9139_v62, %v9140_v20 }
 0xbdc   :  { %10663 = vmatmul.mubr.msk.f32.vlgmr.msra.gmra.mrb[12].mxu0 %vm2118_vm14, %v9583_v35 }
 0xbdd   :  { %11175 = vmatpush3.bf16.msra.mxu0 %v11174_v54  ;;  %10669 = vmatprep.mubr.msk.f32.mxu0 %vm11550_vm7, %v11548_v17  ;;  %v9119_v54 = vand.u32 4294901760, %v9118_v63  ;;  %v9142_v58 = vand.u32 4294901760, %v9141_v8 }
 0xbde   :  { %11176 = vmatprep.subr.bf16.mxu0 %v11549_v55 }
 0xbdf   :  { %v9120_v1 = vsub.f32 %v9118_v63, %v9119_v54 }
 0xbe1   :  { %v9121_v5 = vand.u32 4294901760, %v9120_v1 }
 0xbe4   :  { %10670 = vmatmul.mubr.f32.vlgmr.msra.gmra.mrb[12].mxu0 %v8134_v19 }
 0xbe5   :  { %11178 = vmatpush3.bf16.msra.mxu0 %v11168_v56  ;;  %10676 = vmatprep.mubr.msk.f32.mxu0 %vm11550_vm7, %v11548_v17 }
 0xbe6   :  { %11179 = vmatprep.subr.bf16.mxu0 %v11549_v55 }
 0xbec   :  { %10677 = vmatmul.mubr.f32.vlgmr.msra.gmra.mrb[12].mxu0 %v8135_v10 }
 0xbed   :  { %11181 = vmatpush3.bf16.msra.mxu0 %v11180_v36  ;;  %10683 = vmatprep.mubr.msk.f32.mxu0 %vm11550_vm7, %v11548_v17  ;;  %v9132_v36 = vsub.f32 %v9027_v50, %v9044_v18 }
 0xbee   :  { %11182 = vmatprep.subr.bf16.mxu0 %v11549_v55 }
 0xbef   :  { %v9133_v34 = vand.u32 4294901760, %v9132_v36  ;;  %v11237_v47 = vpack.c.bf16 %v9139_v62, %v9132_v36 }
 0xbf1   :  { %v9134_v11 = vsub.f32 %v9132_v36, %v9133_v34 }
 0xbf3   :  { %v9135_v59 = vand.u32 4294901760, %v9134_v11 }
 0xbf4   :  { %10684 = vmatmul.mubr.msk.f32.vlgmr.msra.gmra.mrb[12].mxu0 %vm2118_vm14, %v9583_v35 }
 0xbf5   :  { %11184 = vmatpush3.bf16.msra.mxu0 %v11168_v56  ;;  %10690 = vmatprep.mubr.msk.f32.mxu0 %vm11550_vm7, %v11548_v17  ;;  %v9125_v56 = vsub.f32 %v9026_v51, %v9041_v53  ;;  %v11231_v22 = vpack.c.bf16 %v9142_v58, %v9135_v59 }
 0xbf6   :  { %11221 = vmatprep.subr.bf16.mxu0 %v11549_v55 }
 0xbf7   :  { %v9126_v60 = vand.u32 4294901760, %v9125_v56  ;;  %v11234_v23 = vpack.c.bf16 %v9125_v56, %v9118_v63 }
 0xbf9   :  { %v9127_v2 = vsub.f32 %v9125_v56, %v9126_v60  ;;  %v11246_v15 = vpack.c.bf16 %v9126_v60, %v9119_v54 }
 0xbfb   :  { %v9128_v7 = vand.u32 4294901760, %v9127_v2 }
 0xbfc   :  { %10691 = vmatmul.mubr.msk.f32.vlgmr.msra.gmra.mrb[12].mxu0 %vm2118_vm14, %v9583_v35  ;;  %v11195_v35 = vpack.c.bf16 %v8644_v33, %v8637_v32  ;;  %v9588_v32 = vld [vmem:[%s12401_s2 + $0x90] ss:$0 sm:$0xff]  ;;  %s11559_s2 = smov 4  }
 0xbfd   :  { %10767 = vmatprep.mubr.msk.f32.mxu0 %vm11550_vm7, %v11548_v17  ;;  %11223 = vmatpush3.bf16.msra.mxu0 %v12346_v9 }
 0xbfe   :  { %11224 = vmatprep.subr.bf16.mxu0 %v11549_v55 }
 0xc01   :  { %11226 = vmatpush3.bf16.msra.mxu0 %v11225_v61 }
 0xc02   :  { %11227 = vmatprep.subr.bf16.mxu0 %v11549_v55 }
 0xc03   :  { %v8061_v39 = vpop.xlane.xlu0 %8060 }
 0xc04   :  { %v8062_v41 = vmax.f32 %v8061_v39, 1.0 }
 0xc06   :  { %11516 = vrcp.f32 %v8062_v41 }
 0xc10   :  { %v11517_v19 = vpop.eup %11516 }
 0xccf   :  { %v8521_v44 = vpop.f32.mrb[12].mxu0 }
 0xcd0   :  { %v8526_v43 = vmul.f32 %v11517_v19, %v8521_v44  ;;  %v10692_v49 = vpop.f32.mrb[13].mxu0 }
 0xcd2   :  { %v8537_v12 = vsel %vm41_vm1, %v8526_v43, 0 }
 0xcd3   :  { %v8608_v10 = vand.u32 4294901760, %v8537_v12 }
 0xcd5   :  { %v8609_v46 = vsub.f32 %v8537_v12, %v8608_v10 }
 0xcd7   :  { %v8610_v52 = vand.u32 4294901760, %v8609_v46 }
 0xcd9   :  { %v8611_v42 = vsub.f32 %v8609_v46, %v8610_v52 }
 0xcdb   :  { %v8612_v6 = vand.u32 4294901760, %v8611_v42 }
 0xcdd   :  { %10702 = vmatmul.mubr.f32.vlgmr.msra.gmra.mrb[18].mxu1 %v8612_v6 }
 0xcde   :  { %11193 = vmatpush3.bf16.msra.mxu1 %v11192_v48  ;;  %10712 = vmatprep.mubr.msk.f32.mxu1 %vm11550_vm7, %v11548_v17 }
 0xcdf   :  { %11194 = vmatprep.subr.bf16.mxu1 %v11549_v55 }
 0xce2   :  { %11196 = vmatpush3.bf16.msra.mxu1 %v11195_v35 }
 0xce3   :  { %11197 = vmatprep.subr.bf16.mxu1 %v11549_v55 }
 0xce5   :  { %10713 = vmatmul.mubr.f32.vlgmr.msra.gmra.mrb[18].mxu1 %v8608_v10 }
 0xce6   :  { %11199 = vmatpush3.bf16.msra.mxu1 %v11198_v29  ;;  %10723 = vmatprep.mubr.msk.f32.mxu1 %vm11550_vm7, %v11548_v17 }
 0xce7   :  { %11200 = vmatprep.subr.bf16.mxu1 %v11549_v55 }
 0xcea   :  { %11202 = vmatpush3.bf16.msra.mxu1 %v11201_v37 }
 0xceb   :  { %11203 = vmatprep.subr.bf16.mxu1 %v11549_v55 }
 0xced   :  { %10724 = vmatmul.mubr.f32.vlgmr.msra.gmra.mrb[18].mxu1 %v8609_v46 }
 0xcee   :  { %11205 = vmatpush3.bf16.msra.mxu1 %v12307_v57  ;;  %10734 = vmatprep.mubr.msk.f32.mxu1 %vm11550_vm7, %v11548_v17 }
 0xcef   :  { %11206 = vmatprep.subr.bf16.mxu1 %v11549_v55 }
 0xcf2   :  { %11208 = vmatpush3.bf16.msra.mxu1 %v11189_v26 }
 0xcf3   :  { %11209 = vmatprep.subr.bf16.mxu1 %v11549_v55 }
 0xcf5   :  { %10735 = vmatmul.mubr.f32.vlgmr.msra.gmra.mrb[18].mxu1 %v8610_v52 }
 0xcf6   :  { %11211 = vmatpush3.bf16.msra.mxu1 %v11210_v31  ;;  %10745 = vmatprep.mubr.msk.f32.mxu1 %vm11550_vm7, %v11548_v17 }
 0xcf7   :  { %11212 = vmatprep.subr.bf16.mxu1 %v11549_v55 }
 0xcfa   :  { %11214 = vmatpush3.bf16.msra.mxu1 %v11213_v38 }
 0xcfb   :  { %11215 = vmatprep.subr.bf16.mxu1 %v11549_v55 }
 0xcfd   :  { %10746 = vmatmul.mubr.f32.vlgmr.msra.gmra.mrb[18].mxu1 %v8608_v10 }
 0xcfe   :  { %11217 = vmatpush3.bf16.msra.mxu1 %v12307_v57  ;;  %10756 = vmatprep.mubr.msk.f32.mxu1 %vm11550_vm7, %v11548_v17  ;;  %v11228_v57 = vpack.c.bf16 %v9128_v7, %v9121_v5 }
 0xcff   :  { %11218 = vmatprep.subr.bf16.mxu1 %v11549_v55 }
 0xd02   :  { %11220 = vmatpush3.bf16.msra.mxu1 %v11189_v26  ;;  %v11249_v26 = vpack.c.bf16 %v9140_v20, %v9133_v34 }
 0xd05   :  { %10757 = vmatmul.mubr.f32.vlgmr.msra.gmra.mrb[18].mxu1 %v8608_v10 }
 0xdd8   :  { %v9020_v4 = vpop.f32.mrb[18].mxu1 }
 0xdd9   :  { %v11257_v25 = vadd.f32 %v9587_v27, %v9020_v4  ;;  %v10758_v28 = vpop.f32.mrb[19].mxu1 }
 0xddb   :  { %v9024_v40 = vmax.f32 %v11257_v25, 0.0 }
 0xddd   :  { %v9035_v24 = vsel %vm41_vm1, %v9024_v40, 0  ;;  %vm9522_vm1 = vcmask 25600  }
 0xdde   :  { %v9106_v16 = vand.u32 4294901760, %v9035_v24 }
 0xde0   :  { %v9107_v0 = vsub.f32 %v9035_v24, %v9106_v16 }
 0xde2   :  { %v9108_v48 = vand.u32 4294901760, %v9107_v0 }
 0xde4   :  { %v9109_v3 = vsub.f32 %v9107_v0, %v9108_v48 }
 0xde6   :  { %v9110_v30 = vand.u32 4294901760, %v9109_v3 }
 0xde8   :  { %10768 = vmatmul.mubr.f32.vlgmr.msra.gmra.mrb[14].mxu0 %v9110_v30 }
 0xde9   :  { %11229 = vmatpush3.bf16.msra.mxu0 %v11228_v57  ;;  %10778 = vmatprep.mubr.msk.f32.mxu0 %vm11550_vm7, %v11548_v17 }
 0xdea   :  { %11230 = vmatprep.subr.bf16.mxu0 %v11549_v55 }
 0xded   :  { %11232 = vmatpush3.bf16.msra.mxu0 %v11231_v22 }
 0xdee   :  { %11233 = vmatprep.subr.bf16.mxu0 %v11549_v55 }
 0xdf0   :  { %10779 = vmatmul.mubr.f32.vlgmr.msra.gmra.mrb[14].mxu0 %v9106_v16 }
 0xdf1   :  { %11235 = vmatpush3.bf16.msra.mxu0 %v11234_v23  ;;  %10789 = vmatprep.mubr.msk.f32.mxu0 %vm11550_vm7, %v11548_v17 }
 0xdf2   :  { %11236 = vmatprep.subr.bf16.mxu0 %v11549_v55 }
 0xdf5   :  { %11238 = vmatpush3.bf16.msra.mxu0 %v11237_v47 }
 0xdf6   :  { %11239 = vmatprep.subr.bf16.mxu0 %v11549_v55 }
 0xdf8   :  { %10790 = vmatmul.mubr.f32.vlgmr.msra.gmra.mrb[14].mxu0 %v9107_v0 }
 0xdf9   :  { %11241 = vmatpush3.bf16.msra.mxu0 %v12346_v9  ;;  %10800 = vmatprep.mubr.msk.f32.mxu0 %vm11550_vm7, %v11548_v17 }
 0xdfa   :  { %11242 = vmatprep.subr.bf16.mxu0 %v11549_v55 }
 0xdfd   :  { %11244 = vmatpush3.bf16.msra.mxu0 %v11225_v61 }
 0xdfe   :  { %11245 = vmatprep.subr.bf16.mxu0 %v11549_v55 }
 0xe00   :  { %10801 = vmatmul.mubr.f32.vlgmr.msra.gmra.mrb[14].mxu0 %v9108_v48 }
 0xe01   :  { %11247 = vmatpush3.bf16.msra.mxu0 %v11246_v15  ;;  %10811 = vmatprep.mubr.msk.f32.mxu0 %vm11550_vm7, %v11548_v17 }
 0xe02   :  { %11248 = vmatprep.subr.bf16.mxu0 %v11549_v55 }
 0xe05   :  { %11250 = vmatpush3.bf16.msra.mxu0 %v11249_v26 }
 0xe06   :  { %11251 = vmatprep.subr.bf16.mxu0 %v11549_v55 }
 0xe08   :  { %10812 = vmatmul.mubr.f32.vlgmr.msra.gmra.mrb[14].mxu0 %v9106_v16 }
 0xe09   :  { %11253 = vmatpush3.bf16.msra.mxu0 %v12346_v9  ;;  %10822 = vmatprep.mubr.msk.f32.mxu0 %vm11550_vm7, %v11548_v17 }
 0xe0a   :  { %11254 = vmatprep.subr.bf16.mxu0 %v11549_v55 }
 0xe0d   :  { %11256 = vmatpush3.bf16.msra.mxu0 %v11225_v61 }
 0xe10   :  { %10823 = vmatmul.mubr.f32.vlgmr.msra.gmra.mrb[14].mxu0 %v9106_v16 }
 0xee3   :  { %v9518_v33 = vpop.f32.mrb[14].mxu0 }
 0xee4   :  { %v11258_v35 = vadd.f32 %v9588_v32, %v9518_v33  ;;  %v10824_v29 = vpop.f32.mrb[15].mxu0 }
 0xee6   :  { %v9523_v37 = vsel %vm9522_vm1, %v11258_v35, -inf }
 0xee7   :  { %9524 = vmax.xlane.f32.xlu1 %v9523_v37 }
 0xef8   :  { %9542 = vrot.lane.b32.xlu1 %v11258_v35, %s11557_s6  ;;  %s9556_s6 = sshll.u32 %s11560_s10, 4  ;;  %s9557_s6 = int_to_ptr.vmem [resolvable:$true] %s9556_s6 }
 0xef9   :  { %s11524_s11 = scalar_lea.vmem %s9557_s6, 32  ;;  %p11529_p1 = scmp.lt.s32.totalorder %s9557_s6, %s9557_s6 }
 0xefa   :  { %p11525_p0 = scmp.ne.s32.totalorder %s9557_s6, %s11524_s11  ;;  %p11530_p2 = scmp.lt.s32.totalorder %s11524_s11, %s11524_s11 }
 0xefc   :  { %p11531_p3 = por %p11530_p2, %p11529_p1 }
 0xefe   :  { %p11532_p4 = pnand %p11531_p3, %p11525_p0 }
 0xf74   :  { %v9525_v31 = vpop.xlane.xlu1 %9524 }
 0xf75   :  { %v9526_v38 = vsub.f32 %v11258_v35, %v9525_v31 }
 0xf77   :  { %v9527_v39 = vmul.f32 1.442695, %v9526_v38 }
 0xf78   :  { %v9543_v46 = vpop.permute.xlu1 %9542 }
 0xf79   :  { %11518 = vpow2.f32 %v9527_v39 }
 0xf83   :  { %v11519_v17 = vpop.eup %11518 }
 0xf84   :  { %v9529_v55 = vsel %vm9522_vm1, %v11519_v17, 0.0 }
 0xf85   :  { %9530 = vadd.xlane.f32.xlu0 %v9529_v55 }
0x1012   :  { %v9531_v41 = vpop.xlane.xlu0 %9530 }
0x1013   :  { %11520 = vlog2.f32 %v9531_v41 }
0x101d   :  { %v11521_v19 = vpop.eup %11520 }
0x101e   :  { %v9533_v44 = vmul.f32 0.6931472, %v11521_v19 }
0x1020   :  { %v9534_v43 = vsub.f32 %v9526_v38, %v9533_v44 }
0x1022   :  { %v9535_v49 = vmul.f32 1.442695, %v9534_v43 }
0x1024   :  { %11522 = vpow2.f32 %v9535_v49 }
0x102e   :  { %v11523_v12 = vpop.eup %11522 }
0x102f   :  { %9538 = vrot.lane.b32.xlu0 %v11523_v12, %s11559_s2 }
0x10a1   :  { %v9539_v10 = vpop.permute.xlu0 %9538 }
0x10a2   :  { %v9546_v52 = vsel %vm9545_vm4, %v9534_v43, %v9539_v10 }
0x10a3   :  { %v9547_v42 = vsel %vm571_vm0, %v9546_v52, %v9543_v46 }
0x10a4   :  { %9549 = vst.msk [vmem:[#allocation2] sm:$0x3] %vm9548_vm5, %v9547_v42 }
0x10a5   :  { %11535 = shalt.err (!%p11532_p4)
}
0x10a6   :  { %s11536_s14 = scalar_lea.hbm %s12402_s3, 32 }
0x10a7   :  { %p11537_p5 = scmp.ne.s32.totalorder %s12402_s3, %s11536_s14  ;;  %p11540_p6 = scmp.lt.u32.totalorder %s11536_s14, %s12402_s3 }
0x10a9   :  { %p11542_p7 = pnand %p11540_p6, %p11537_p5 }
0x10ab   :  { %11545 = shalt.err (!%p11542_p7)
}
0x10ac   :  { %9559 = dma.vmem_to_hbm [thread:$0]  %s9557_s6, 32, %s12402_s3, [#allocation3]  }
0x10ad   :  { %11546 = dma.done.wait [#allocation3], 32  }
0x10ae   :  { %11547 = vsyncadd [#allocation3], 4294967264 }
0x10af   :  { %9563 = vsyncpa [#allocation3], 1 }

</bundles_post_ra>
